<compile_context>
chip_gen: v7x
topology: tpu7x:2x2x1
jax: 0.10.0
libtpu: 0.0.40
codegen_flags: <defaults>
</compile_context>

<pallas_src>
import jax
import jax.numpy as jnp
from jax import lax
from jax.experimental import pallas as pl
from jax.experimental.pallas import tpu as pltpu


def _round_up(n, m):
    return ((n + m - 1) // m) * m


def _reorder_gates(w, H):
    """Permute gate columns from PyTorch order (i, f, g, o) to (i, f, o, g).

    Lets the kernel apply one sigmoid to a contiguous 3H slab (i, f, o) and
    one tanh to the trailing H slab (g)."""
    return jnp.concatenate(
        [w[..., :2 * H], w[..., 3 * H:4 * H], w[..., 2 * H:3 * H]], axis=-1)


def simple_classifier_kernel(emb_ref, mask_ref, wih_ref, b_ref,
                             whh_f_ref, whh_b_ref, wout_ref, bout_ref,
                             out_ref, gates_f_ref, gates_b_ref):
    T, Bp, H4 = gates_f_ref.shape
    H = H4 // 4

    # ---- Phase 1: hoisted input projection (one big lane-dense GEMM) ------
    #   [T*Bp, E] (bf16) @ [E, 8H] (bf16) -> f32, + bias (both directions).
    gx = jnp.dot(emb_ref[...], wih_ref[...],
                 preferred_element_type=jnp.float32) + b_ref[...]
    gates_f_ref[...] = gx[:, :H4].reshape(T, Bp, H4)
    gates_b_ref[...] = gx[:, H4:].reshape(T, Bp, H4)

    whh_f = whh_f_ref[...]
    whh_b = whh_b_ref[...]

    def cell(gates, c):
        # gate order (i, f, o, g): one sigmoid over 3H lanes + one tanh over H.
        sig = jax.nn.sigmoid(gates[:, :3 * H])
        g = jnp.tanh(gates[:, 3 * H:])
        i = sig[:, 0 * H:1 * H]
        f = sig[:, 1 * H:2 * H]
        o = sig[:, 2 * H:3 * H]
        c_new = f * c + i * g
        h_new = o * jnp.tanh(c_new)
        return h_new, c_new

    # ---- Phase 2: fused bidirectional recurrence ---------------------------
    def step(t, carry):
        h_f, c_f, h_b, c_b = carry
        tb = T - 1 - t
        # Both directions' recurrent matmuls issued back-to-back (MXU pipelining).
        gf = gates_f_ref[t] + jnp.dot(h_f, whh_f,
                                      preferred_element_type=jnp.float32)
        gb = gates_b_ref[tb] + jnp.dot(h_b, whh_b,
                                       preferred_element_type=jnp.float32)
        h_f_new, c_f_new = cell(gf, c_f)
        h_b_new, c_b_new = cell(gb, c_b)
        keep_f = mask_ref[t] > 0.5      # [Bp, 1]
        keep_b = mask_ref[tb] > 0.5
        h_f = jnp.where(keep_f, h_f_new, h_f)
        c_f = jnp.where(keep_f, c_f_new, c_f)
        h_b = jnp.where(keep_b, h_b_new, h_b)
        c_b = jnp.where(keep_b, c_b_new, c_b)
        return (h_f, c_f, h_b, c_b)

    z = jnp.zeros((Bp, H), jnp.float32)
    unroll = True if T <= 16 else 8
    h_f, _, h_b, _ = lax.fori_loop(0, T, step, (z, z, z, z), unroll=unroll)

    # ---- Phase 3: output layer (lane-padded to 128 -> unmasked store) ------
    final = jnp.concatenate([h_f, h_b], axis=-1)                 # [Bp, 2H]
    logits = jnp.dot(final, wout_ref[...],
                     preferred_element_type=jnp.float32) + bout_ref[...]
    out_ref[...] = jax.nn.sigmoid(logits)                        # [Bp, Op]


def simple_classifier_forward(x, params):
    """x: [B, T] int32 token ids (padding_idx == 1). Returns [B, O] f32."""
    B, T = x.shape
    E = params["embedding"].shape[1]
    H = params["w_hh_f"].shape[0]
    O = params["w_out"].shape[1]

    Bp = max(8, _round_up(B, 8))        # sublane-aligned batch
    Op = max(128, _round_up(O, 128))    # lane-dense output

    # Pad batch with padding tokens (id 1): zero embedding row, mask = 0, so
    # padded rows stay at h = 0 and are sliced away below.
    x_pad = jnp.full((Bp, T), 1, dtype=jnp.int32).at[:B, :].set(x)
    x_tm = x_pad.T                                          # [T, Bp] time-major

    mask_tm = (x_tm != 1).astype(jnp.float32)[..., None]    # [T, Bp, 1]
    emb_tm = params["embedding"][x_tm].astype(jnp.bfloat16)  # [T, Bp, E]
    emb_flat = emb_tm.reshape(T * Bp, E)                    # single GEMM operand
    # embed_dropout / output-layer Dropout: identity in eval mode.

    # Fuse both directions' input projections into one [E, 8H] weight; gate
    # columns permuted (i,f,g,o) -> (i,f,o,g); bf16 operands, f32 accumulate.
    wih = jnp.concatenate([_reorder_gates(params["w_ih_f"], H),
                           _reorder_gates(params["w_ih_b"], H)],
                          axis=1).astype(jnp.bfloat16)       # [E, 8H]
    b = jnp.concatenate([_reorder_gates(params["b_f"], H),
                         _reorder_gates(params["b_b"], H)], axis=1)  # [1, 8H]
    whh_f = _reorder_gates(params["w_hh_f"], H)
    whh_b = _reorder_gates(params["w_hh_b"], H)

    w_out = jnp.zeros((2 * H, Op), jnp.float32).at[:, :O].set(params["w_out"])
    b_out = jnp.zeros((1, Op), jnp.float32).at[:, :O].set(params["b_out"])

    # VMEM budget (inputs + output + gate scratch), with headroom.
    need = (emb_flat.size * 2 + mask_tm.size * 4 + wih.size * 2 + b.size * 4
            + whh_f.size * 4 + whh_b.size * 4 + w_out.size * 4 + b_out.size * 4
            + Bp * Op * 4 + 2 * T * Bp * 4 * H * 4)
    vmem_limit = int(min(64 << 20, max(16 << 20, 2 * need + (2 << 20))))
    # TODO(synk): for large B*T (v7x has only 64 MiB VMEM) stream emb / gate
    #             slabs in T-chunks with a grid + BlockSpec instead of keeping
    #             the whole tensor resident.

    vmem = pl.BlockSpec(memory_space=pltpu.MemorySpace.VMEM)
    out = pl.pallas_call(
        simple_classifier_kernel,
        out_shape=jax.ShapeDtypeStruct((Bp, Op), jnp.float32),
        in_specs=[vmem] * 8,
        out_specs=vmem,
        scratch_shapes=[pltpu.VMEM((T, Bp, 4 * H), jnp.float32),
                        pltpu.VMEM((T, Bp, 4 * H), jnp.float32)],
        compiler_params=pltpu.CompilerParams(vmem_limit_bytes=vmem_limit),
    )(emb_flat, mask_tm, wih, b, whh_f, whh_b, w_out, b_out)

    return out[:B, :O]


def simple_classifier_reference(x, params):
    """Pure-JAX f32 reference of the same forward pass (for validation)."""
    mask = (x != 1).astype(jnp.float32)[:, :, None]      # [B, T, 1]
    emb = params["embedding"][x].astype(jnp.float32)     # [B, T, E]
    B, T, _ = emb.shape
    H = params["w_hh_f"].shape[0]

    def run(w_ih, w_hh, b, reverse):
        def step(carry, t):
            h, c = carry
            idx = T - 1 - t if reverse else t
            x_t = emb[:, idx, :]
            m_t = mask[:, idx, :]
            gates = x_t @ w_ih + h @ w_hh + b
            i = jax.nn.sigmoid(gates[:, :H])
            f = jax.nn.sigmoid(gates[:, H:2 * H])
            g = jnp.tanh(gates[:, 2 * H:3 * H])
            o = jax.nn.sigmoid(gates[:, 3 * H:])
            c_new = f * c + i * g
            h_new = o * jnp.tanh(c_new)
            h = m_t * h_new + (1.0 - m_t) * h
            c = m_t * c_new + (1.0 - m_t) * c
            return (h, c), None

        h0 = jnp.zeros((B, H), jnp.float32)
        (h, _), _ = lax.scan(step, (h0, h0), jnp.arange(T))
        return h

    h_f = run(params["w_ih_f"], params["w_hh_f"], params["b_f"], False)
    h_b = run(params["w_ih_b"], params["w_hh_b"], params["b_b"], True)
    final = jnp.concatenate([h_f, h_b], axis=-1)
    return jax.nn.sigmoid(final @ params["w_out"] + params["b_out"])


def init_params(key, vocab_size, emb_size, hidden_size, output_size):
    ks = jax.random.split(key, 10)
    scale = 0.1
    H4 = 4 * hidden_size
    embedding = scale * jax.random.normal(ks[0], (vocab_size, emb_size), jnp.float32)
    embedding = embedding.at[1].set(0.0)  # padding_idx=1 row is zero
    params = {
        "embedding": embedding,
        # forward LSTM (weights stored input-major: x @ W_ih, h @ W_hh),
        # PyTorch gate order (i, f, g, o)
        "w_ih_f": scale * jax.random.normal(ks[1], (emb_size, H4), jnp.float32),
        "w_hh_f": scale * jax.random.normal(ks[2], (hidden_size, H4), jnp.float32),
        "b_f": scale * jax.random.normal(ks[3], (1, H4), jnp.float32),
        # backward LSTM
        "w_ih_b": scale * jax.random.normal(ks[4], (emb_size, H4), jnp.float32),
        "w_hh_b": scale * jax.random.normal(ks[5], (hidden_size, H4), jnp.float32),
        "b_b": scale * jax.random.normal(ks[6], (1, H4), jnp.float32),
        # output Linear(2H -> output_size), stored transposed for final @ W
        "w_out": scale * jax.random.normal(ks[7], (2 * hidden_size, output_size),
                                           jnp.float32),
        "b_out": scale * jax.random.normal(ks[8], (1, output_size), jnp.float32),
    }
    return params


if __name__ == "__main__":
    key = jax.random.PRNGKey(0)
    vocab_size, emb_size, hidden_size, output_size = 50, 32, 32, 5
    B, T = 2, 8

    pkey, xkey = jax.random.split(key)
    params = init_params(pkey, vocab_size, emb_size, hidden_size, output_size)

    # token ids in [2, vocab_size); append trailing padding (id == 1)
    x = jax.random.randint(xkey, (B, T), 2, vocab_size, dtype=jnp.int32)
    x = x.at[0, 6:].set(1)   # sequence 0 has length 6
    x = x.at[1, 4:].set(1)   # sequence 1 has length 4

    preds = simple_classifier_forward(x, params)
    preds = jax.block_until_ready(preds)
    assert preds.shape == (B, output_size)
    assert bool(jnp.all(jnp.isfinite(preds)))

    ref = jax.block_until_ready(simple_classifier_reference(x, params))
    assert bool(jnp.all(jnp.abs(preds - ref) < 1e-2)), "mismatch vs reference"

    print("KERNEL_OK")
</pallas_src>

<mosaic_0001>
module attributes {stable_mosaic.version = 11 : i64} {
  func.func @simple_classifier_kernel(%arg0: memref<64x32xbf16, #tpu.memory_space<vmem>>, %arg1: memref<8x8x1xf32, #tpu.memory_space<vmem>>, %arg2: memref<32x256xbf16, #tpu.memory_space<vmem>>, %arg3: memref<1x256xf32, #tpu.memory_space<vmem>>, %arg4: memref<32x128xf32, #tpu.memory_space<vmem>>, %arg5: memref<32x128xf32, #tpu.memory_space<vmem>>, %arg6: memref<64x128xf32, #tpu.memory_space<vmem>>, %arg7: memref<1x128xf32, #tpu.memory_space<vmem>>, %arg8: memref<8x128xf32, #tpu.memory_space<vmem>>, %arg9: memref<8x8x128xf32, #tpu.memory_space<vmem>>, %arg10: memref<8x8x128xf32, #tpu.memory_space<vmem>>) attributes {dimension_semantics = [], scalar_prefetch = 0 : i64, scratch_operands = 2 : i64, tpu.core_type = #tpu.core_type<tc>} {
    %c0 = arith.constant 0 : index
    %c0_0 = arith.constant 0 : index
    %0 = vector.load %arg0[%c0, %c0_0] : memref<64x32xbf16, #tpu.memory_space<vmem>>, vector<64x32xbf16>
    %c0_1 = arith.constant 0 : index
    %c0_2 = arith.constant 0 : index
    %1 = vector.load %arg2[%c0_1, %c0_2] : memref<32x256xbf16, #tpu.memory_space<vmem>>, vector<32x256xbf16>
    %cst = arith.constant dense<0.000000e+00> : vector<64x256xf32>
    %2 = tpu.matmul %0, %1, %cst {dimension_numbers = #tpu.dot_dimension_numbers<[1], [0], [0], [1], [0, 0, 1, 1], [], []>} : vector<64x32xbf16>, vector<32x256xbf16>, vector<64x256xf32> -> vector<64x256xf32>
    %c0_3 = arith.constant 0 : index
    %c0_4 = arith.constant 0 : index
    %3 = vector.load %arg3[%c0_3, %c0_4] : memref<1x256xf32, #tpu.memory_space<vmem>>, vector<1x256xf32>
    %4 = vector.broadcast %3 : vector<1x256xf32> to vector<64x256xf32>
    %5 = arith.addf %2, %4 : vector<64x256xf32>
    %6 = vector.extract_strided_slice %5 {offsets = [0, 0], sizes = [64, 128], strides = [1, 1]} : vector<64x256xf32> to vector<64x128xf32>
    %7 = vector.shape_cast %6 : vector<64x128xf32> to vector<8x8x128xf32>
    %c0_5 = arith.constant 0 : index
    %c0_6 = arith.constant 0 : index
    %c0_7 = arith.constant 0 : index
    %8 = vector.load %arg9[%c0_5, %c0_6, %c0_7] : memref<8x8x128xf32, #tpu.memory_space<vmem>>, vector<8x8x128xf32>
    tpu.vector_store %arg9[%c0_5, %c0_6, %c0_7], %7 {strides = array<i32>} : memref<8x8x128xf32, #tpu.memory_space<vmem>>, vector<8x8x128xf32>,
    %9 = vector.extract_strided_slice %5 {offsets = [0, 128], sizes = [64, 128], strides = [1, 1]} : vector<64x256xf32> to vector<64x128xf32>
    %10 = vector.shape_cast %9 : vector<64x128xf32> to vector<8x8x128xf32>
    %c0_8 = arith.constant 0 : index
    %c0_9 = arith.constant 0 : index
    %c0_10 = arith.constant 0 : index
    %11 = vector.load %arg10[%c0_8, %c0_9, %c0_10] : memref<8x8x128xf32, #tpu.memory_space<vmem>>, vector<8x8x128xf32>
    tpu.vector_store %arg10[%c0_8, %c0_9, %c0_10], %10 {strides = array<i32>} : memref<8x8x128xf32, #tpu.memory_space<vmem>>, vector<8x8x128xf32>,
    %c0_11 = arith.constant 0 : index
    %c0_12 = arith.constant 0 : index
    %12 = vector.load %arg4[%c0_11, %c0_12] : memref<32x128xf32, #tpu.memory_space<vmem>>, vector<32x128xf32>
    %c0_13 = arith.constant 0 : index
    %c0_14 = arith.constant 0 : index
    %13 = vector.load %arg5[%c0_13, %c0_14] : memref<32x128xf32, #tpu.memory_space<vmem>>, vector<32x128xf32>
    %cst_15 = arith.constant 0.000000e+00 : f32
    %14 = vector.broadcast %cst_15 : f32 to vector<8x32xf32>
    %c0_i32 = arith.constant 0 : i32
    %c7_i32 = arith.constant 7 : i32
    %15 = arith.subi %c7_i32, %c0_i32 : i32
    %16 = arith.index_cast %c0_i32 : i32 to index
    %c0_16 = arith.constant 0 : index
    %c0_17 = arith.constant 0 : index
    %17 = vector.load %arg9[%16, %c0_16, %c0_17] : memref<8x8x128xf32, #tpu.memory_space<vmem>>, vector<1x8x128xf32>
    %18 = vector.shape_cast %17 : vector<1x8x128xf32> to vector<8x128xf32>
    %cst_18 = arith.constant dense<0.000000e+00> : vector<8x128xf32>
    %19 = tpu.matmul %14, %12, %cst_18 {dimension_numbers = #tpu.dot_dimension_numbers<[1], [0], [0], [1], [0, 0, 1, 1], [], []>} : vector<8x32xf32>, vector<32x128xf32>, vector<8x128xf32> -> vector<8x128xf32>
    %20 = arith.addf %18, %19 : vector<8x128xf32>
    %21 = arith.index_cast %15 : i32 to index
    %c0_19 = arith.constant 0 : index
    %c0_20 = arith.constant 0 : index
    %22 = vector.load %arg10[%21, %c0_19, %c0_20] : memref<8x8x128xf32, #tpu.memory_space<vmem>>, vector<1x8x128xf32>
    %23 = vector.shape_cast %22 : vector<1x8x128xf32> to vector<8x128xf32>
    %cst_21 = arith.constant dense<0.000000e+00> : vector<8x128xf32>
    %24 = tpu.matmul %14, %13, %cst_21 {dimension_numbers = #tpu.dot_dimension_numbers<[1], [0], [0], [1], [0, 0, 1, 1], [], []>} : vector<8x32xf32>, vector<32x128xf32>, vector<8x128xf32> -> vector<8x128xf32>
    %25 = arith.addf %23, %24 : vector<8x128xf32>
    %26 = vector.extract_strided_slice %20 {offsets = [0, 0], sizes = [8, 96], strides = [1, 1]} : vector<8x128xf32> to vector<8x96xf32>
    %27 = arith.negf %26 : vector<8x96xf32>
    %28 = math.exp %27 : vector<8x96xf32>
    %cst_22 = arith.constant 1.000000e+00 : f32
    %29 = vector.broadcast %cst_22 : f32 to vector<8x96xf32>
    %30 = arith.addf %29, %28 : vector<8x96xf32>
    %31 = arith.divf %29, %30 : vector<8x96xf32>
    %32 = vector.extract_strided_slice %20 {offsets = [0, 96], sizes = [8, 32], strides = [1, 1]} : vector<8x128xf32> to vector<8x32xf32>
    %33 = math.tanh %32 : vector<8x32xf32>
    %34 = vector.extract_strided_slice %31 {offsets = [0, 0], sizes = [8, 32], strides = [1, 1]} : vector<8x96xf32> to vector<8x32xf32>
    %35 = vector.extract_strided_slice %31 {offsets = [0, 32], sizes = [8, 32], strides = [1, 1]} : vector<8x96xf32> to vector<8x32xf32>
    %36 = vector.extract_strided_slice %31 {offsets = [0, 64], sizes = [8, 32], strides = [1, 1]} : vector<8x96xf32> to vector<8x32xf32>
    %37 = arith.mulf %35, %14 : vector<8x32xf32>
    %38 = arith.mulf %34, %33 : vector<8x32xf32>
    %39 = arith.addf %37, %38 : vector<8x32xf32>
    %40 = math.tanh %39 : vector<8x32xf32>
    %41 = arith.mulf %36, %40 : vector<8x32xf32>
    %42 = vector.extract_strided_slice %25 {offsets = [0, 0], sizes = [8, 96], strides = [1, 1]} : vector<8x128xf32> to vector<8x96xf32>
    %43 = arith.negf %42 : vector<8x96xf32>
    %44 = math.exp %43 : vector<8x96xf32>
    %cst_23 = arith.constant 1.000000e+00 : f32
    %45 = vector.broadcast %cst_23 : f32 to vector<8x96xf32>
    %46 = arith.addf %45, %44 : vector<8x96xf32>
    %47 = arith.divf %45, %46 : vector<8x96xf32>
    %48 = vector.extract_strided_slice %25 {offsets = [0, 96], sizes = [8, 32], strides = [1, 1]} : vector<8x128xf32> to vector<8x32xf32>
    %49 = math.tanh %48 : vector<8x32xf32>
    %50 = vector.extract_strided_slice %47 {offsets = [0, 0], sizes = [8, 32], strides = [1, 1]} : vector<8x96xf32> to vector<8x32xf32>
    %51 = vector.extract_strided_slice %47 {offsets = [0, 32], sizes = [8, 32], strides = [1, 1]} : vector<8x96xf32> to vector<8x32xf32>
    %52 = vector.extract_strided_slice %47 {offsets = [0, 64], sizes = [8, 32], strides = [1, 1]} : vector<8x96xf32> to vector<8x32xf32>
    %53 = arith.mulf %51, %14 : vector<8x32xf32>
    %54 = arith.mulf %50, %49 : vector<8x32xf32>
    %55 = arith.addf %53, %54 : vector<8x32xf32>
    %56 = math.tanh %55 : vector<8x32xf32>
    %57 = arith.mulf %52, %56 : vector<8x32xf32>
    %58 = arith.index_cast %c0_i32 : i32 to index
    %c0_24 = arith.constant 0 : index
    %c0_25 = arith.constant 0 : index
    %59 = vector.load %arg1[%58, %c0_24, %c0_25] : memref<8x8x1xf32, #tpu.memory_space<vmem>>, vector<1x8x1xf32>
    %60 = vector.shape_cast %59 : vector<1x8x1xf32> to vector<8x1xf32>
    %cst_26 = arith.constant 5.000000e-01 : f32
    %61 = vector.broadcast %cst_26 : f32 to vector<8x1xf32>
    %62 = arith.cmpf ogt, %60, %61 : vector<8x1xf32>
    %63 = arith.index_cast %15 : i32 to index
    %c0_27 = arith.constant 0 : index
    %c0_28 = arith.constant 0 : index
    %64 = vector.load %arg1[%63, %c0_27, %c0_28] : memref<8x8x1xf32, #tpu.memory_space<vmem>>, vector<1x8x1xf32>
    %65 = vector.shape_cast %64 : vector<1x8x1xf32> to vector<8x1xf32>
    %cst_29 = arith.constant 5.000000e-01 : f32
    %66 = vector.broadcast %cst_29 : f32 to vector<8x1xf32>
    %67 = arith.cmpf ogt, %65, %66 : vector<8x1xf32>
    %68 = vector.shape_cast %62 : vector<8x1xi1> to vector<8x1xi1>
    %69 = vector.broadcast %68 : vector<8x1xi1> to vector<8x32xi1>
    %70 = arith.select %69, %41, %14 : vector<8x32xi1>, vector<8x32xf32>
    %71 = vector.shape_cast %62 : vector<8x1xi1> to vector<8x1xi1>
    %72 = vector.broadcast %71 : vector<8x1xi1> to vector<8x32xi1>
    %73 = arith.select %72, %39, %14 : vector<8x32xi1>, vector<8x32xf32>
    %74 = vector.shape_cast %67 : vector<8x1xi1> to vector<8x1xi1>
    %75 = vector.broadcast %74 : vector<8x1xi1> to vector<8x32xi1>
    %76 = arith.select %75, %57, %14 : vector<8x32xi1>, vector<8x32xf32>
    %77 = vector.shape_cast %67 : vector<8x1xi1> to vector<8x1xi1>
    %78 = vector.broadcast %77 : vector<8x1xi1> to vector<8x32xi1>
    %79 = arith.select %78, %55, %14 : vector<8x32xi1>, vector<8x32xf32>
    %c1_i32 = arith.constant 1 : i32
    %c7_i32_30 = arith.constant 7 : i32
    %80 = arith.subi %c7_i32_30, %c1_i32 : i32
    %81 = arith.index_cast %c1_i32 : i32 to index
    %c0_31 = arith.constant 0 : index
    %c0_32 = arith.constant 0 : index
    %82 = vector.load %arg9[%81, %c0_31, %c0_32] : memref<8x8x128xf32, #tpu.memory_space<vmem>>, vector<1x8x128xf32>
    %83 = vector.shape_cast %82 : vector<1x8x128xf32> to vector<8x128xf32>
    %cst_33 = arith.constant dense<0.000000e+00> : vector<8x128xf32>
    %84 = tpu.matmul %70, %12, %cst_33 {dimension_numbers = #tpu.dot_dimension_numbers<[1], [0], [0], [1], [0, 0, 1, 1], [], []>} : vector<8x32xf32>, vector<32x128xf32>, vector<8x128xf32> -> vector<8x128xf32>
    %85 = arith.addf %83, %84 : vector<8x128xf32>
    %86 = arith.index_cast %80 : i32 to index
    %c0_34 = arith.constant 0 : index
    %c0_35 = arith.constant 0 : index
    %87 = vector.load %arg10[%86, %c0_34, %c0_35] : memref<8x8x128xf32, #tpu.memory_space<vmem>>, vector<1x8x128xf32>
    %88 = vector.shape_cast %87 : vector<1x8x128xf32> to vector<8x128xf32>
    %cst_36 = arith.constant dense<0.000000e+00> : vector<8x128xf32>
    %89 = tpu.matmul %76, %13, %cst_36 {dimension_numbers = #tpu.dot_dimension_numbers<[1], [0], [0], [1], [0, 0, 1, 1], [], []>} : vector<8x32xf32>, vector<32x128xf32>, vector<8x128xf32> -> vector<8x128xf32>
    %90 = arith.addf %88, %89 : vector<8x128xf32>
    %91 = vector.extract_strided_slice %85 {offsets = [0, 0], sizes = [8, 96], strides = [1, 1]} : vector<8x128xf32> to vector<8x96xf32>
    %92 = arith.negf %91 : vector<8x96xf32>
    %93 = math.exp %92 : vector<8x96xf32>
    %cst_37 = arith.constant 1.000000e+00 : f32
    %94 = vector.broadcast %cst_37 : f32 to vector<8x96xf32>
    %95 = arith.addf %94, %93 : vector<8x96xf32>
    %96 = arith.divf %94, %95 : vector<8x96xf32>
    %97 = vector.extract_strided_slice %85 {offsets = [0, 96], sizes = [8, 32], strides = [1, 1]} : vector<8x128xf32> to vector<8x32xf32>
    %98 = math.tanh %97 : vector<8x32xf32>
    %99 = vector.extract_strided_slice %96 {offsets = [0, 0], sizes = [8, 32], strides = [1, 1]} : vector<8x96xf32> to vector<8x32xf32>
    %100 = vector.extract_strided_slice %96 {offsets = [0, 32], sizes = [8, 32], strides = [1, 1]} : vector<8x96xf32> to vector<8x32xf32>
    %101 = vector.extract_strided_slice %96 {offsets = [0, 64], sizes = [8, 32], strides = [1, 1]} : vector<8x96xf32> to vector<8x32xf32>
    %102 = arith.mulf %100, %73 : vector<8x32xf32>
    %103 = arith.mulf %99, %98 : vector<8x32xf32>
    %104 = arith.addf %102, %103 : vector<8x32xf32>
    %105 = math.tanh %104 : vector<8x32xf32>
    %106 = arith.mulf %101, %105 : vector<8x32xf32>
    %107 = vector.extract_strided_slice %90 {offsets = [0, 0], sizes = [8, 96], strides = [1, 1]} : vector<8x128xf32> to vector<8x96xf32>
    %108 = arith.negf %107 : vector<8x96xf32>
    %109 = math.exp %108 : vector<8x96xf32>
    %cst_38 = arith.constant 1.000000e+00 : f32
    %110 = vector.broadcast %cst_38 : f32 to vector<8x96xf32>
    %111 = arith.addf %110, %109 : vector<8x96xf32>
    %112 = arith.divf %110, %111 : vector<8x96xf32>
    %113 = vector.extract_strided_slice %90 {offsets = [0, 96], sizes = [8, 32], strides = [1, 1]} : vector<8x128xf32> to vector<8x32xf32>
    %114 = math.tanh %113 : vector<8x32xf32>
    %115 = vector.extract_strided_slice %112 {offsets = [0, 0], sizes = [8, 32], strides = [1, 1]} : vector<8x96xf32> to vector<8x32xf32>
    %116 = vector.extract_strided_slice %112 {offsets = [0, 32], sizes = [8, 32], strides = [1, 1]} : vector<8x96xf32> to vector<8x32xf32>
    %117 = vector.extract_strided_slice %112 {offsets = [0, 64], sizes = [8, 32], strides = [1, 1]} : vector<8x96xf32> to vector<8x32xf32>
    %118 = arith.mulf %116, %79 : vector<8x32xf32>
    %119 = arith.mulf %115, %114 : vector<8x32xf32>
    %120 = arith.addf %118, %119 : vector<8x32xf32>
    %121 = math.tanh %120 : vector<8x32xf32>
    %122 = arith.mulf %117, %121 : vector<8x32xf32>
    %123 = arith.index_cast %c1_i32 : i32 to index
    %c0_39 = arith.constant 0 : index
    %c0_40 = arith.constant 0 : index
    %124 = vector.load %arg1[%123, %c0_39, %c0_40] : memref<8x8x1xf32, #tpu.memory_space<vmem>>, vector<1x8x1xf32>
    %125 = vector.shape_cast %124 : vector<1x8x1xf32> to vector<8x1xf32>
    %cst_41 = arith.constant 5.000000e-01 : f32
    %126 = vector.broadcast %cst_41 : f32 to vector<8x1xf32>
    %127 = arith.cmpf ogt, %125, %126 : vector<8x1xf32>
    %128 = arith.index_cast %80 : i32 to index
    %c0_42 = arith.constant 0 : index
    %c0_43 = arith.constant 0 : index
    %129 = vector.load %arg1[%128, %c0_42, %c0_43] : memref<8x8x1xf32, #tpu.memory_space<vmem>>, vector<1x8x1xf32>
    %130 = vector.shape_cast %129 : vector<1x8x1xf32> to vector<8x1xf32>
    %cst_44 = arith.constant 5.000000e-01 : f32
    %131 = vector.broadcast %cst_44 : f32 to vector<8x1xf32>
    %132 = arith.cmpf ogt, %130, %131 : vector<8x1xf32>
    %133 = vector.shape_cast %127 : vector<8x1xi1> to vector<8x1xi1>
    %134 = vector.broadcast %133 : vector<8x1xi1> to vector<8x32xi1>
    %135 = arith.select %134, %106, %70 : vector<8x32xi1>, vector<8x32xf32>
    %136 = vector.shape_cast %127 : vector<8x1xi1> to vector<8x1xi1>
    %137 = vector.broadcast %136 : vector<8x1xi1> to vector<8x32xi1>
    %138 = arith.select %137, %104, %73 : vector<8x32xi1>, vector<8x32xf32>
    %139 = vector.shape_cast %132 : vector<8x1xi1> to vector<8x1xi1>
    %140 = vector.broadcast %139 : vector<8x1xi1> to vector<8x32xi1>
    %141 = arith.select %140, %122, %76 : vector<8x32xi1>, vector<8x32xf32>
    %142 = vector.shape_cast %132 : vector<8x1xi1> to vector<8x1xi1>
    %143 = vector.broadcast %142 : vector<8x1xi1> to vector<8x32xi1>
    %144 = arith.select %143, %120, %79 : vector<8x32xi1>, vector<8x32xf32>
    %c2_i32 = arith.constant 2 : i32
    %c7_i32_45 = arith.constant 7 : i32
    %145 = arith.subi %c7_i32_45, %c2_i32 : i32
    %146 = arith.index_cast %c2_i32 : i32 to index
    %c0_46 = arith.constant 0 : index
    %c0_47 = arith.constant 0 : index
    %147 = vector.load %arg9[%146, %c0_46, %c0_47] : memref<8x8x128xf32, #tpu.memory_space<vmem>>, vector<1x8x128xf32>
    %148 = vector.shape_cast %147 : vector<1x8x128xf32> to vector<8x128xf32>
    %cst_48 = arith.constant dense<0.000000e+00> : vector<8x128xf32>
    %149 = tpu.matmul %135, %12, %cst_48 {dimension_numbers = #tpu.dot_dimension_numbers<[1], [0], [0], [1], [0, 0, 1, 1], [], []>} : vector<8x32xf32>, vector<32x128xf32>, vector<8x128xf32> -> vector<8x128xf32>
    %150 = arith.addf %148, %149 : vector<8x128xf32>
    %151 = arith.index_cast %145 : i32 to index
    %c0_49 = arith.constant 0 : index
    %c0_50 = arith.constant 0 : index
    %152 = vector.load %arg10[%151, %c0_49, %c0_50] : memref<8x8x128xf32, #tpu.memory_space<vmem>>, vector<1x8x128xf32>
    %153 = vector.shape_cast %152 : vector<1x8x128xf32> to vector<8x128xf32>
    %cst_51 = arith.constant dense<0.000000e+00> : vector<8x128xf32>
    %154 = tpu.matmul %141, %13, %cst_51 {dimension_numbers = #tpu.dot_dimension_numbers<[1], [0], [0], [1], [0, 0, 1, 1], [], []>} : vector<8x32xf32>, vector<32x128xf32>, vector<8x128xf32> -> vector<8x128xf32>
    %155 = arith.addf %153, %154 : vector<8x128xf32>
    %156 = vector.extract_strided_slice %150 {offsets = [0, 0], sizes = [8, 96], strides = [1, 1]} : vector<8x128xf32> to vector<8x96xf32>
    %157 = arith.negf %156 : vector<8x96xf32>
    %158 = math.exp %157 : vector<8x96xf32>
    %cst_52 = arith.constant 1.000000e+00 : f32
    %159 = vector.broadcast %cst_52 : f32 to vector<8x96xf32>
    %160 = arith.addf %159, %158 : vector<8x96xf32>
    %161 = arith.divf %159, %160 : vector<8x96xf32>
    %162 = vector.extract_strided_slice %150 {offsets = [0, 96], sizes = [8, 32], strides = [1, 1]} : vector<8x128xf32> to vector<8x32xf32>
    %163 = math.tanh %162 : vector<8x32xf32>
    %164 = vector.extract_strided_slice %161 {offsets = [0, 0], sizes = [8, 32], strides = [1, 1]} : vector<8x96xf32> to vector<8x32xf32>
    %165 = vector.extract_strided_slice %161 {offsets = [0, 32], sizes = [8, 32], strides = [1, 1]} : vector<8x96xf32> to vector<8x32xf32>
    %166 = vector.extract_strided_slice %161 {offsets = [0, 64], sizes = [8, 32], strides = [1, 1]} : vector<8x96xf32> to vector<8x32xf32>
    %167 = arith.mulf %165, %138 : vector<8x32xf32>
    %168 = arith.mulf %164, %163 : vector<8x32xf32>
    %169 = arith.addf %167, %168 : vector<8x32xf32>
    %170 = math.tanh %169 : vector<8x32xf32>
    %171 = arith.mulf %166, %170 : vector<8x32xf32>
    %172 = vector.extract_strided_slice %155 {offsets = [0, 0], sizes = [8, 96], strides = [1, 1]} : vector<8x128xf32> to vector<8x96xf32>
    %173 = arith.negf %172 : vector<8x96xf32>
    %174 = math.exp %173 : vector<8x96xf32>
    %cst_53 = arith.constant 1.000000e+00 : f32
    %175 = vector.broadcast %cst_53 : f32 to vector<8x96xf32>
    %176 = arith.addf %175, %174 : vector<8x96xf32>
    %177 = arith.divf %175, %176 : vector<8x96xf32>
    %178 = vector.extract_strided_slice %155 {offsets = [0, 96], sizes = [8, 32], strides = [1, 1]} : vector<8x128xf32> to vector<8x32xf32>
    %179 = math.tanh %178 : vector<8x32xf32>
    %180 = vector.extract_strided_slice %177 {offsets = [0, 0], sizes = [8, 32], strides = [1, 1]} : vector<8x96xf32> to vector<8x32xf32>
    %181 = vector.extract_strided_slice %177 {offsets = [0, 32], sizes = [8, 32], strides = [1, 1]} : vector<8x96xf32> to vector<8x32xf32>
    %182 = vector.extract_strided_slice %177 {offsets = [0, 64], sizes = [8, 32], strides = [1, 1]} : vector<8x96xf32> to vector<8x32xf32>
    %183 = arith.mulf %181, %144 : vector<8x32xf32>
    %184 = arith.mulf %180, %179 : vector<8x32xf32>
    %185 = arith.addf %183, %184 : vector<8x32xf32>
    %186 = math.tanh %185 : vector<8x32xf32>
    %187 = arith.mulf %182, %186 : vector<8x32xf32>
    %188 = arith.index_cast %c2_i32 : i32 to index
    %c0_54 = arith.constant 0 : index
    %c0_55 = arith.constant 0 : index
    %189 = vector.load %arg1[%188, %c0_54, %c0_55] : memref<8x8x1xf32, #tpu.memory_space<vmem>>, vector<1x8x1xf32>
    %190 = vector.shape_cast %189 : vector<1x8x1xf32> to vector<8x1xf32>
    %cst_56 = arith.constant 5.000000e-01 : f32
    %191 = vector.broadcast %cst_56 : f32 to vector<8x1xf32>
    %192 = arith.cmpf ogt, %190, %191 : vector<8x1xf32>
    %193 = arith.index_cast %145 : i32 to index
    %c0_57 = arith.constant 0 : index
    %c0_58 = arith.constant 0 : index
    %194 = vector.load %arg1[%193, %c0_57, %c0_58] : memref<8x8x1xf32, #tpu.memory_space<vmem>>, vector<1x8x1xf32>
    %195 = vector.shape_cast %194 : vector<1x8x1xf32> to vector<8x1xf32>
    %cst_59 = arith.constant 5.000000e-01 : f32
    %196 = vector.broadcast %cst_59 : f32 to vector<8x1xf32>
    %197 = arith.cmpf ogt, %195, %196 : vector<8x1xf32>
    %198 = vector.shape_cast %192 : vector<8x1xi1> to vector<8x1xi1>
    %199 = vector.broadcast %198 : vector<8x1xi1> to vector<8x32xi1>
    %200 = arith.select %199, %171, %135 : vector<8x32xi1>, vector<8x32xf32>
    %201 = vector.shape_cast %192 : vector<8x1xi1> to vector<8x1xi1>
    %202 = vector.broadcast %201 : vector<8x1xi1> to vector<8x32xi1>
    %203 = arith.select %202, %169, %138 : vector<8x32xi1>, vector<8x32xf32>
    %204 = vector.shape_cast %197 : vector<8x1xi1> to vector<8x1xi1>
    %205 = vector.broadcast %204 : vector<8x1xi1> to vector<8x32xi1>
    %206 = arith.select %205, %187, %141 : vector<8x32xi1>, vector<8x32xf32>
    %207 = vector.shape_cast %197 : vector<8x1xi1> to vector<8x1xi1>
    %208 = vector.broadcast %207 : vector<8x1xi1> to vector<8x32xi1>
    %209 = arith.select %208, %185, %144 : vector<8x32xi1>, vector<8x32xf32>
    %c3_i32 = arith.constant 3 : i32
    %c7_i32_60 = arith.constant 7 : i32
    %210 = arith.subi %c7_i32_60, %c3_i32 : i32
    %211 = arith.index_cast %c3_i32 : i32 to index
    %c0_61 = arith.constant 0 : index
    %c0_62 = arith.constant 0 : index
    %212 = vector.load %arg9[%211, %c0_61, %c0_62] : memref<8x8x128xf32, #tpu.memory_space<vmem>>, vector<1x8x128xf32>
    %213 = vector.shape_cast %212 : vector<1x8x128xf32> to vector<8x128xf32>
    %cst_63 = arith.constant dense<0.000000e+00> : vector<8x128xf32>
    %214 = tpu.matmul %200, %12, %cst_63 {dimension_numbers = #tpu.dot_dimension_numbers<[1], [0], [0], [1], [0, 0, 1, 1], [], []>} : vector<8x32xf32>, vector<32x128xf32>, vector<8x128xf32> -> vector<8x128xf32>
    %215 = arith.addf %213, %214 : vector<8x128xf32>
    %216 = arith.index_cast %210 : i32 to index
    %c0_64 = arith.constant 0 : index
    %c0_65 = arith.constant 0 : index
    %217 = vector.load %arg10[%216, %c0_64, %c0_65] : memref<8x8x128xf32, #tpu.memory_space<vmem>>, vector<1x8x128xf32>
    %218 = vector.shape_cast %217 : vector<1x8x128xf32> to vector<8x128xf32>
    %cst_66 = arith.constant dense<0.000000e+00> : vector<8x128xf32>
    %219 = tpu.matmul %206, %13, %cst_66 {dimension_numbers = #tpu.dot_dimension_numbers<[1], [0], [0], [1], [0, 0, 1, 1], [], []>} : vector<8x32xf32>, vector<32x128xf32>, vector<8x128xf32> -> vector<8x128xf32>
    %220 = arith.addf %218, %219 : vector<8x128xf32>
    %221 = vector.extract_strided_slice %215 {offsets = [0, 0], sizes = [8, 96], strides = [1, 1]} : vector<8x128xf32> to vector<8x96xf32>
    %222 = arith.negf %221 : vector<8x96xf32>
    %223 = math.exp %222 : vector<8x96xf32>
    %cst_67 = arith.constant 1.000000e+00 : f32
    %224 = vector.broadcast %cst_67 : f32 to vector<8x96xf32>
    %225 = arith.addf %224, %223 : vector<8x96xf32>
    %226 = arith.divf %224, %225 : vector<8x96xf32>
    %227 = vector.extract_strided_slice %215 {offsets = [0, 96], sizes = [8, 32], strides = [1, 1]} : vector<8x128xf32> to vector<8x32xf32>
    %228 = math.tanh %227 : vector<8x32xf32>
    %229 = vector.extract_strided_slice %226 {offsets = [0, 0], sizes = [8, 32], strides = [1, 1]} : vector<8x96xf32> to vector<8x32xf32>
    %230 = vector.extract_strided_slice %226 {offsets = [0, 32], sizes = [8, 32], strides = [1, 1]} : vector<8x96xf32> to vector<8x32xf32>
    %231 = vector.extract_strided_slice %226 {offsets = [0, 64], sizes = [8, 32], strides = [1, 1]} : vector<8x96xf32> to vector<8x32xf32>
    %232 = arith.mulf %230, %203 : vector<8x32xf32>
    %233 = arith.mulf %229, %228 : vector<8x32xf32>
    %234 = arith.addf %232, %233 : vector<8x32xf32>
    %235 = math.tanh %234 : vector<8x32xf32>
    %236 = arith.mulf %231, %235 : vector<8x32xf32>
    %237 = vector.extract_strided_slice %220 {offsets = [0, 0], sizes = [8, 96], strides = [1, 1]} : vector<8x128xf32> to vector<8x96xf32>
    %238 = arith.negf %237 : vector<8x96xf32>
    %239 = math.exp %238 : vector<8x96xf32>
    %cst_68 = arith.constant 1.000000e+00 : f32
    %240 = vector.broadcast %cst_68 : f32 to vector<8x96xf32>
    %241 = arith.addf %240, %239 : vector<8x96xf32>
    %242 = arith.divf %240, %241 : vector<8x96xf32>
    %243 = vector.extract_strided_slice %220 {offsets = [0, 96], sizes = [8, 32], strides = [1, 1]} : vector<8x128xf32> to vector<8x32xf32>
    %244 = math.tanh %243 : vector<8x32xf32>
    %245 = vector.extract_strided_slice %242 {offsets = [0, 0], sizes = [8, 32], strides = [1, 1]} : vector<8x96xf32> to vector<8x32xf32>
    %246 = vector.extract_strided_slice %242 {offsets = [0, 32], sizes = [8, 32], strides = [1, 1]} : vector<8x96xf32> to vector<8x32xf32>
    %247 = vector.extract_strided_slice %242 {offsets = [0, 64], sizes = [8, 32], strides = [1, 1]} : vector<8x96xf32> to vector<8x32xf32>
    %248 = arith.mulf %246, %209 : vector<8x32xf32>
    %249 = arith.mulf %245, %244 : vector<8x32xf32>
    %250 = arith.addf %248, %249 : vector<8x32xf32>
    %251 = math.tanh %250 : vector<8x32xf32>
    %252 = arith.mulf %247, %251 : vector<8x32xf32>
    %253 = arith.index_cast %c3_i32 : i32 to index
    %c0_69 = arith.constant 0 : index
    %c0_70 = arith.constant 0 : index
    %254 = vector.load %arg1[%253, %c0_69, %c0_70] : memref<8x8x1xf32, #tpu.memory_space<vmem>>, vector<1x8x1xf32>
    %255 = vector.shape_cast %254 : vector<1x8x1xf32> to vector<8x1xf32>
    %cst_71 = arith.constant 5.000000e-01 : f32
    %256 = vector.broadcast %cst_71 : f32 to vector<8x1xf32>
    %257 = arith.cmpf ogt, %255, %256 : vector<8x1xf32>
    %258 = arith.index_cast %210 : i32 to index
    %c0_72 = arith.constant 0 : index
    %c0_73 = arith.constant 0 : index
    %259 = vector.load %arg1[%258, %c0_72, %c0_73] : memref<8x8x1xf32, #tpu.memory_space<vmem>>, vector<1x8x1xf32>
    %260 = vector.shape_cast %259 : vector<1x8x1xf32> to vector<8x1xf32>
    %cst_74 = arith.constant 5.000000e-01 : f32
    %261 = vector.broadcast %cst_74 : f32 to vector<8x1xf32>
    %262 = arith.cmpf ogt, %260, %261 : vector<8x1xf32>
    %263 = vector.shape_cast %257 : vector<8x1xi1> to vector<8x1xi1>
    %264 = vector.broadcast %263 : vector<8x1xi1> to vector<8x32xi1>
    %265 = arith.select %264, %236, %200 : vector<8x32xi1>, vector<8x32xf32>
    %266 = vector.shape_cast %257 : vector<8x1xi1> to vector<8x1xi1>
    %267 = vector.broadcast %266 : vector<8x1xi1> to vector<8x32xi1>
    %268 = arith.select %267, %234, %203 : vector<8x32xi1>, vector<8x32xf32>
    %269 = vector.shape_cast %262 : vector<8x1xi1> to vector<8x1xi1>
    %270 = vector.broadcast %269 : vector<8x1xi1> to vector<8x32xi1>
    %271 = arith.select %270, %252, %206 : vector<8x32xi1>, vector<8x32xf32>
    %272 = vector.shape_cast %262 : vector<8x1xi1> to vector<8x1xi1>
    %273 = vector.broadcast %272 : vector<8x1xi1> to vector<8x32xi1>
    %274 = arith.select %273, %250, %209 : vector<8x32xi1>, vector<8x32xf32>
    %c4_i32 = arith.constant 4 : i32
    %c7_i32_75 = arith.constant 7 : i32
    %275 = arith.subi %c7_i32_75, %c4_i32 : i32
    %276 = arith.index_cast %c4_i32 : i32 to index
    %c0_76 = arith.constant 0 : index
    %c0_77 = arith.constant 0 : index
    %277 = vector.load %arg9[%276, %c0_76, %c0_77] : memref<8x8x128xf32, #tpu.memory_space<vmem>>, vector<1x8x128xf32>
    %278 = vector.shape_cast %277 : vector<1x8x128xf32> to vector<8x128xf32>
    %cst_78 = arith.constant dense<0.000000e+00> : vector<8x128xf32>
    %279 = tpu.matmul %265, %12, %cst_78 {dimension_numbers = #tpu.dot_dimension_numbers<[1], [0], [0], [1], [0, 0, 1, 1], [], []>} : vector<8x32xf32>, vector<32x128xf32>, vector<8x128xf32> -> vector<8x128xf32>
    %280 = arith.addf %278, %279 : vector<8x128xf32>
    %281 = arith.index_cast %275 : i32 to index
    %c0_79 = arith.constant 0 : index
    %c0_80 = arith.constant 0 : index
    %282 = vector.load %arg10[%281, %c0_79, %c0_80] : memref<8x8x128xf32, #tpu.memory_space<vmem>>, vector<1x8x128xf32>
    %283 = vector.shape_cast %282 : vector<1x8x128xf32> to vector<8x128xf32>
    %cst_81 = arith.constant dense<0.000000e+00> : vector<8x128xf32>
    %284 = tpu.matmul %271, %13, %cst_81 {dimension_numbers = #tpu.dot_dimension_numbers<[1], [0], [0], [1], [0, 0, 1, 1], [], []>} : vector<8x32xf32>, vector<32x128xf32>, vector<8x128xf32> -> vector<8x128xf32>
    %285 = arith.addf %283, %284 : vector<8x128xf32>
    %286 = vector.extract_strided_slice %280 {offsets = [0, 0], sizes = [8, 96], strides = [1, 1]} : vector<8x128xf32> to vector<8x96xf32>
    %287 = arith.negf %286 : vector<8x96xf32>
    %288 = math.exp %287 : vector<8x96xf32>
    %cst_82 = arith.constant 1.000000e+00 : f32
    %289 = vector.broadcast %cst_82 : f32 to vector<8x96xf32>
    %290 = arith.addf %289, %288 : vector<8x96xf32>
    %291 = arith.divf %289, %290 : vector<8x96xf32>
    %292 = vector.extract_strided_slice %280 {offsets = [0, 96], sizes = [8, 32], strides = [1, 1]} : vector<8x128xf32> to vector<8x32xf32>
    %293 = math.tanh %292 : vector<8x32xf32>
    %294 = vector.extract_strided_slice %291 {offsets = [0, 0], sizes = [8, 32], strides = [1, 1]} : vector<8x96xf32> to vector<8x32xf32>
    %295 = vector.extract_strided_slice %291 {offsets = [0, 32], sizes = [8, 32], strides = [1, 1]} : vector<8x96xf32> to vector<8x32xf32>
    %296 = vector.extract_strided_slice %291 {offsets = [0, 64], sizes = [8, 32], strides = [1, 1]} : vector<8x96xf32> to vector<8x32xf32>
    %297 = arith.mulf %295, %268 : vector<8x32xf32>
    %298 = arith.mulf %294, %293 : vector<8x32xf32>
    %299 = arith.addf %297, %298 : vector<8x32xf32>
    %300 = math.tanh %299 : vector<8x32xf32>
    %301 = arith.mulf %296, %300 : vector<8x32xf32>
    %302 = vector.extract_strided_slice %285 {offsets = [0, 0], sizes = [8, 96], strides = [1, 1]} : vector<8x128xf32> to vector<8x96xf32>
    %303 = arith.negf %302 : vector<8x96xf32>
    %304 = math.exp %303 : vector<8x96xf32>
    %cst_83 = arith.constant 1.000000e+00 : f32
    %305 = vector.broadcast %cst_83 : f32 to vector<8x96xf32>
    %306 = arith.addf %305, %304 : vector<8x96xf32>
    %307 = arith.divf %305, %306 : vector<8x96xf32>
    %308 = vector.extract_strided_slice %285 {offsets = [0, 96], sizes = [8, 32], strides = [1, 1]} : vector<8x128xf32> to vector<8x32xf32>
    %309 = math.tanh %308 : vector<8x32xf32>
    %310 = vector.extract_strided_slice %307 {offsets = [0, 0], sizes = [8, 32], strides = [1, 1]} : vector<8x96xf32> to vector<8x32xf32>
    %311 = vector.extract_strided_slice %307 {offsets = [0, 32], sizes = [8, 32], strides = [1, 1]} : vector<8x96xf32> to vector<8x32xf32>
    %312 = vector.extract_strided_slice %307 {offsets = [0, 64], sizes = [8, 32], strides = [1, 1]} : vector<8x96xf32> to vector<8x32xf32>
    %313 = arith.mulf %311, %274 : vector<8x32xf32>
    %314 = arith.mulf %310, %309 : vector<8x32xf32>
    %315 = arith.addf %313, %314 : vector<8x32xf32>
    %316 = math.tanh %315 : vector<8x32xf32>
    %317 = arith.mulf %312, %316 : vector<8x32xf32>
    %318 = arith.index_cast %c4_i32 : i32 to index
    %c0_84 = arith.constant 0 : index
    %c0_85 = arith.constant 0 : index
    %319 = vector.load %arg1[%318, %c0_84, %c0_85] : memref<8x8x1xf32, #tpu.memory_space<vmem>>, vector<1x8x1xf32>
    %320 = vector.shape_cast %319 : vector<1x8x1xf32> to vector<8x1xf32>
    %cst_86 = arith.constant 5.000000e-01 : f32
    %321 = vector.broadcast %cst_86 : f32 to vector<8x1xf32>
    %322 = arith.cmpf ogt, %320, %321 : vector<8x1xf32>
    %323 = arith.index_cast %275 : i32 to index
    %c0_87 = arith.constant 0 : index
    %c0_88 = arith.constant 0 : index
    %324 = vector.load %arg1[%323, %c0_87, %c0_88] : memref<8x8x1xf32, #tpu.memory_space<vmem>>, vector<1x8x1xf32>
    %325 = vector.shape_cast %324 : vector<1x8x1xf32> to vector<8x1xf32>
    %cst_89 = arith.constant 5.000000e-01 : f32
    %326 = vector.broadcast %cst_89 : f32 to vector<8x1xf32>
    %327 = arith.cmpf ogt, %325, %326 : vector<8x1xf32>
    %328 = vector.shape_cast %322 : vector<8x1xi1> to vector<8x1xi1>
    %329 = vector.broadcast %328 : vector<8x1xi1> to vector<8x32xi1>
    %330 = arith.select %329, %301, %265 : vector<8x32xi1>, vector<8x32xf32>
    %331 = vector.shape_cast %322 : vector<8x1xi1> to vector<8x1xi1>
    %332 = vector.broadcast %331 : vector<8x1xi1> to vector<8x32xi1>
    %333 = arith.select %332, %299, %268 : vector<8x32xi1>, vector<8x32xf32>
    %334 = vector.shape_cast %327 : vector<8x1xi1> to vector<8x1xi1>
    %335 = vector.broadcast %334 : vector<8x1xi1> to vector<8x32xi1>
    %336 = arith.select %335, %317, %271 : vector<8x32xi1>, vector<8x32xf32>
    %337 = vector.shape_cast %327 : vector<8x1xi1> to vector<8x1xi1>
    %338 = vector.broadcast %337 : vector<8x1xi1> to vector<8x32xi1>
    %339 = arith.select %338, %315, %274 : vector<8x32xi1>, vector<8x32xf32>
    %c5_i32 = arith.constant 5 : i32
    %c7_i32_90 = arith.constant 7 : i32
    %340 = arith.subi %c7_i32_90, %c5_i32 : i32
    %341 = arith.index_cast %c5_i32 : i32 to index
    %c0_91 = arith.constant 0 : index
    %c0_92 = arith.constant 0 : index
    %342 = vector.load %arg9[%341, %c0_91, %c0_92] : memref<8x8x128xf32, #tpu.memory_space<vmem>>, vector<1x8x128xf32>
    %343 = vector.shape_cast %342 : vector<1x8x128xf32> to vector<8x128xf32>
    %cst_93 = arith.constant dense<0.000000e+00> : vector<8x128xf32>
    %344 = tpu.matmul %330, %12, %cst_93 {dimension_numbers = #tpu.dot_dimension_numbers<[1], [0], [0], [1], [0, 0, 1, 1], [], []>} : vector<8x32xf32>, vector<32x128xf32>, vector<8x128xf32> -> vector<8x128xf32>
    %345 = arith.addf %343, %344 : vector<8x128xf32>
    %346 = arith.index_cast %340 : i32 to index
    %c0_94 = arith.constant 0 : index
    %c0_95 = arith.constant 0 : index
    %347 = vector.load %arg10[%346, %c0_94, %c0_95] : memref<8x8x128xf32, #tpu.memory_space<vmem>>, vector<1x8x128xf32>
    %348 = vector.shape_cast %347 : vector<1x8x128xf32> to vector<8x128xf32>
    %cst_96 = arith.constant dense<0.000000e+00> : vector<8x128xf32>
    %349 = tpu.matmul %336, %13, %cst_96 {dimension_numbers = #tpu.dot_dimension_numbers<[1], [0], [0], [1], [0, 0, 1, 1], [], []>} : vector<8x32xf32>, vector<32x128xf32>, vector<8x128xf32> -> vector<8x128xf32>
    %350 = arith.addf %348, %349 : vector<8x128xf32>
    %351 = vector.extract_strided_slice %345 {offsets = [0, 0], sizes = [8, 96], strides = [1, 1]} : vector<8x128xf32> to vector<8x96xf32>
    %352 = arith.negf %351 : vector<8x96xf32>
    %353 = math.exp %352 : vector<8x96xf32>
    %cst_97 = arith.constant 1.000000e+00 : f32
    %354 = vector.broadcast %cst_97 : f32 to vector<8x96xf32>
    %355 = arith.addf %354, %353 : vector<8x96xf32>
    %356 = arith.divf %354, %355 : vector<8x96xf32>
    %357 = vector.extract_strided_slice %345 {offsets = [0, 96], sizes = [8, 32], strides = [1, 1]} : vector<8x128xf32> to vector<8x32xf32>
    %358 = math.tanh %357 : vector<8x32xf32>
    %359 = vector.extract_strided_slice %356 {offsets = [0, 0], sizes = [8, 32], strides = [1, 1]} : vector<8x96xf32> to vector<8x32xf32>
    %360 = vector.extract_strided_slice %356 {offsets = [0, 32], sizes = [8, 32], strides = [1, 1]} : vector<8x96xf32> to vector<8x32xf32>
    %361 = vector.extract_strided_slice %356 {offsets = [0, 64], sizes = [8, 32], strides = [1, 1]} : vector<8x96xf32> to vector<8x32xf32>
    %362 = arith.mulf %360, %333 : vector<8x32xf32>
    %363 = arith.mulf %359, %358 : vector<8x32xf32>
    %364 = arith.addf %362, %363 : vector<8x32xf32>
    %365 = math.tanh %364 : vector<8x32xf32>
    %366 = arith.mulf %361, %365 : vector<8x32xf32>
    %367 = vector.extract_strided_slice %350 {offsets = [0, 0], sizes = [8, 96], strides = [1, 1]} : vector<8x128xf32> to vector<8x96xf32>
    %368 = arith.negf %367 : vector<8x96xf32>
    %369 = math.exp %368 : vector<8x96xf32>
    %cst_98 = arith.constant 1.000000e+00 : f32
    %370 = vector.broadcast %cst_98 : f32 to vector<8x96xf32>
    %371 = arith.addf %370, %369 : vector<8x96xf32>
    %372 = arith.divf %370, %371 : vector<8x96xf32>
    %373 = vector.extract_strided_slice %350 {offsets = [0, 96], sizes = [8, 32], strides = [1, 1]} : vector<8x128xf32> to vector<8x32xf32>
    %374 = math.tanh %373 : vector<8x32xf32>
    %375 = vector.extract_strided_slice %372 {offsets = [0, 0], sizes = [8, 32], strides = [1, 1]} : vector<8x96xf32> to vector<8x32xf32>
    %376 = vector.extract_strided_slice %372 {offsets = [0, 32], sizes = [8, 32], strides = [1, 1]} : vector<8x96xf32> to vector<8x32xf32>
    %377 = vector.extract_strided_slice %372 {offsets = [0, 64], sizes = [8, 32], strides = [1, 1]} : vector<8x96xf32> to vector<8x32xf32>
    %378 = arith.mulf %376, %339 : vector<8x32xf32>
    %379 = arith.mulf %375, %374 : vector<8x32xf32>
    %380 = arith.addf %378, %379 : vector<8x32xf32>
    %381 = math.tanh %380 : vector<8x32xf32>
    %382 = arith.mulf %377, %381 : vector<8x32xf32>
    %383 = arith.index_cast %c5_i32 : i32 to index
    %c0_99 = arith.constant 0 : index
    %c0_100 = arith.constant 0 : index
    %384 = vector.load %arg1[%383, %c0_99, %c0_100] : memref<8x8x1xf32, #tpu.memory_space<vmem>>, vector<1x8x1xf32>
    %385 = vector.shape_cast %384 : vector<1x8x1xf32> to vector<8x1xf32>
    %cst_101 = arith.constant 5.000000e-01 : f32
    %386 = vector.broadcast %cst_101 : f32 to vector<8x1xf32>
    %387 = arith.cmpf ogt, %385, %386 : vector<8x1xf32>
    %388 = arith.index_cast %340 : i32 to index
    %c0_102 = arith.constant 0 : index
    %c0_103 = arith.constant 0 : index
    %389 = vector.load %arg1[%388, %c0_102, %c0_103] : memref<8x8x1xf32, #tpu.memory_space<vmem>>, vector<1x8x1xf32>
    %390 = vector.shape_cast %389 : vector<1x8x1xf32> to vector<8x1xf32>
    %cst_104 = arith.constant 5.000000e-01 : f32
    %391 = vector.broadcast %cst_104 : f32 to vector<8x1xf32>
    %392 = arith.cmpf ogt, %390, %391 : vector<8x1xf32>
    %393 = vector.shape_cast %387 : vector<8x1xi1> to vector<8x1xi1>
    %394 = vector.broadcast %393 : vector<8x1xi1> to vector<8x32xi1>
    %395 = arith.select %394, %366, %330 : vector<8x32xi1>, vector<8x32xf32>
    %396 = vector.shape_cast %387 : vector<8x1xi1> to vector<8x1xi1>
    %397 = vector.broadcast %396 : vector<8x1xi1> to vector<8x32xi1>
    %398 = arith.select %397, %364, %333 : vector<8x32xi1>, vector<8x32xf32>
    %399 = vector.shape_cast %392 : vector<8x1xi1> to vector<8x1xi1>
    %400 = vector.broadcast %399 : vector<8x1xi1> to vector<8x32xi1>
    %401 = arith.select %400, %382, %336 : vector<8x32xi1>, vector<8x32xf32>
    %402 = vector.shape_cast %392 : vector<8x1xi1> to vector<8x1xi1>
    %403 = vector.broadcast %402 : vector<8x1xi1> to vector<8x32xi1>
    %404 = arith.select %403, %380, %339 : vector<8x32xi1>, vector<8x32xf32>
    %c6_i32 = arith.constant 6 : i32
    %c7_i32_105 = arith.constant 7 : i32
    %405 = arith.subi %c7_i32_105, %c6_i32 : i32
    %406 = arith.index_cast %c6_i32 : i32 to index
    %c0_106 = arith.constant 0 : index
    %c0_107 = arith.constant 0 : index
    %407 = vector.load %arg9[%406, %c0_106, %c0_107] : memref<8x8x128xf32, #tpu.memory_space<vmem>>, vector<1x8x128xf32>
    %408 = vector.shape_cast %407 : vector<1x8x128xf32> to vector<8x128xf32>
    %cst_108 = arith.constant dense<0.000000e+00> : vector<8x128xf32>
    %409 = tpu.matmul %395, %12, %cst_108 {dimension_numbers = #tpu.dot_dimension_numbers<[1], [0], [0], [1], [0, 0, 1, 1], [], []>} : vector<8x32xf32>, vector<32x128xf32>, vector<8x128xf32> -> vector<8x128xf32>
    %410 = arith.addf %408, %409 : vector<8x128xf32>
    %411 = arith.index_cast %405 : i32 to index
    %c0_109 = arith.constant 0 : index
    %c0_110 = arith.constant 0 : index
    %412 = vector.load %arg10[%411, %c0_109, %c0_110] : memref<8x8x128xf32, #tpu.memory_space<vmem>>, vector<1x8x128xf32>
    %413 = vector.shape_cast %412 : vector<1x8x128xf32> to vector<8x128xf32>
    %cst_111 = arith.constant dense<0.000000e+00> : vector<8x128xf32>
    %414 = tpu.matmul %401, %13, %cst_111 {dimension_numbers = #tpu.dot_dimension_numbers<[1], [0], [0], [1], [0, 0, 1, 1], [], []>} : vector<8x32xf32>, vector<32x128xf32>, vector<8x128xf32> -> vector<8x128xf32>
    %415 = arith.addf %413, %414 : vector<8x128xf32>
    %416 = vector.extract_strided_slice %410 {offsets = [0, 0], sizes = [8, 96], strides = [1, 1]} : vector<8x128xf32> to vector<8x96xf32>
    %417 = arith.negf %416 : vector<8x96xf32>
    %418 = math.exp %417 : vector<8x96xf32>
    %cst_112 = arith.constant 1.000000e+00 : f32
    %419 = vector.broadcast %cst_112 : f32 to vector<8x96xf32>
    %420 = arith.addf %419, %418 : vector<8x96xf32>
    %421 = arith.divf %419, %420 : vector<8x96xf32>
    %422 = vector.extract_strided_slice %410 {offsets = [0, 96], sizes = [8, 32], strides = [1, 1]} : vector<8x128xf32> to vector<8x32xf32>
    %423 = math.tanh %422 : vector<8x32xf32>
    %424 = vector.extract_strided_slice %421 {offsets = [0, 0], sizes = [8, 32], strides = [1, 1]} : vector<8x96xf32> to vector<8x32xf32>
    %425 = vector.extract_strided_slice %421 {offsets = [0, 32], sizes = [8, 32], strides = [1, 1]} : vector<8x96xf32> to vector<8x32xf32>
    %426 = vector.extract_strided_slice %421 {offsets = [0, 64], sizes = [8, 32], strides = [1, 1]} : vector<8x96xf32> to vector<8x32xf32>
    %427 = arith.mulf %425, %398 : vector<8x32xf32>
    %428 = arith.mulf %424, %423 : vector<8x32xf32>
    %429 = arith.addf %427, %428 : vector<8x32xf32>
    %430 = math.tanh %429 : vector<8x32xf32>
    %431 = arith.mulf %426, %430 : vector<8x32xf32>
    %432 = vector.extract_strided_slice %415 {offsets = [0, 0], sizes = [8, 96], strides = [1, 1]} : vector<8x128xf32> to vector<8x96xf32>
    %433 = arith.negf %432 : vector<8x96xf32>
    %434 = math.exp %433 : vector<8x96xf32>
    %cst_113 = arith.constant 1.000000e+00 : f32
    %435 = vector.broadcast %cst_113 : f32 to vector<8x96xf32>
    %436 = arith.addf %435, %434 : vector<8x96xf32>
    %437 = arith.divf %435, %436 : vector<8x96xf32>
    %438 = vector.extract_strided_slice %415 {offsets = [0, 96], sizes = [8, 32], strides = [1, 1]} : vector<8x128xf32> to vector<8x32xf32>
    %439 = math.tanh %438 : vector<8x32xf32>
    %440 = vector.extract_strided_slice %437 {offsets = [0, 0], sizes = [8, 32], strides = [1, 1]} : vector<8x96xf32> to vector<8x32xf32>
    %441 = vector.extract_strided_slice %437 {offsets = [0, 32], sizes = [8, 32], strides = [1, 1]} : vector<8x96xf32> to vector<8x32xf32>
    %442 = vector.extract_strided_slice %437 {offsets = [0, 64], sizes = [8, 32], strides = [1, 1]} : vector<8x96xf32> to vector<8x32xf32>
    %443 = arith.mulf %441, %404 : vector<8x32xf32>
    %444 = arith.mulf %440, %439 : vector<8x32xf32>
    %445 = arith.addf %443, %444 : vector<8x32xf32>
    %446 = math.tanh %445 : vector<8x32xf32>
    %447 = arith.mulf %442, %446 : vector<8x32xf32>
    %448 = arith.index_cast %c6_i32 : i32 to index
    %c0_114 = arith.constant 0 : index
    %c0_115 = arith.constant 0 : index
    %449 = vector.load %arg1[%448, %c0_114, %c0_115] : memref<8x8x1xf32, #tpu.memory_space<vmem>>, vector<1x8x1xf32>
    %450 = vector.shape_cast %449 : vector<1x8x1xf32> to vector<8x1xf32>
    %cst_116 = arith.constant 5.000000e-01 : f32
    %451 = vector.broadcast %cst_116 : f32 to vector<8x1xf32>
    %452 = arith.cmpf ogt, %450, %451 : vector<8x1xf32>
    %453 = arith.index_cast %405 : i32 to index
    %c0_117 = arith.constant 0 : index
    %c0_118 = arith.constant 0 : index
    %454 = vector.load %arg1[%453, %c0_117, %c0_118] : memref<8x8x1xf32, #tpu.memory_space<vmem>>, vector<1x8x1xf32>
    %455 = vector.shape_cast %454 : vector<1x8x1xf32> to vector<8x1xf32>
    %cst_119 = arith.constant 5.000000e-01 : f32
    %456 = vector.broadcast %cst_119 : f32 to vector<8x1xf32>
    %457 = arith.cmpf ogt, %455, %456 : vector<8x1xf32>
    %458 = vector.shape_cast %452 : vector<8x1xi1> to vector<8x1xi1>
    %459 = vector.broadcast %458 : vector<8x1xi1> to vector<8x32xi1>
    %460 = arith.select %459, %431, %395 : vector<8x32xi1>, vector<8x32xf32>
    %461 = vector.shape_cast %452 : vector<8x1xi1> to vector<8x1xi1>
    %462 = vector.broadcast %461 : vector<8x1xi1> to vector<8x32xi1>
    %463 = arith.select %462, %429, %398 : vector<8x32xi1>, vector<8x32xf32>
    %464 = vector.shape_cast %457 : vector<8x1xi1> to vector<8x1xi1>
    %465 = vector.broadcast %464 : vector<8x1xi1> to vector<8x32xi1>
    %466 = arith.select %465, %447, %401 : vector<8x32xi1>, vector<8x32xf32>
    %467 = vector.shape_cast %457 : vector<8x1xi1> to vector<8x1xi1>
    %468 = vector.broadcast %467 : vector<8x1xi1> to vector<8x32xi1>
    %469 = arith.select %468, %445, %404 : vector<8x32xi1>, vector<8x32xf32>
    %c7_i32_120 = arith.constant 7 : i32
    %c7_i32_121 = arith.constant 7 : i32
    %470 = arith.subi %c7_i32_121, %c7_i32_120 : i32
    %471 = arith.index_cast %c7_i32_120 : i32 to index
    %c0_122 = arith.constant 0 : index
    %c0_123 = arith.constant 0 : index
    %472 = vector.load %arg9[%471, %c0_122, %c0_123] : memref<8x8x128xf32, #tpu.memory_space<vmem>>, vector<1x8x128xf32>
    %473 = vector.shape_cast %472 : vector<1x8x128xf32> to vector<8x128xf32>
    %cst_124 = arith.constant dense<0.000000e+00> : vector<8x128xf32>
    %474 = tpu.matmul %460, %12, %cst_124 {dimension_numbers = #tpu.dot_dimension_numbers<[1], [0], [0], [1], [0, 0, 1, 1], [], []>} : vector<8x32xf32>, vector<32x128xf32>, vector<8x128xf32> -> vector<8x128xf32>
    %475 = arith.addf %473, %474 : vector<8x128xf32>
    %476 = arith.index_cast %470 : i32 to index
    %c0_125 = arith.constant 0 : index
    %c0_126 = arith.constant 0 : index
    %477 = vector.load %arg10[%476, %c0_125, %c0_126] : memref<8x8x128xf32, #tpu.memory_space<vmem>>, vector<1x8x128xf32>
    %478 = vector.shape_cast %477 : vector<1x8x128xf32> to vector<8x128xf32>
    %cst_127 = arith.constant dense<0.000000e+00> : vector<8x128xf32>
    %479 = tpu.matmul %466, %13, %cst_127 {dimension_numbers = #tpu.dot_dimension_numbers<[1], [0], [0], [1], [0, 0, 1, 1], [], []>} : vector<8x32xf32>, vector<32x128xf32>, vector<8x128xf32> -> vector<8x128xf32>
    %480 = arith.addf %478, %479 : vector<8x128xf32>
    %481 = vector.extract_strided_slice %475 {offsets = [0, 0], sizes = [8, 96], strides = [1, 1]} : vector<8x128xf32> to vector<8x96xf32>
    %482 = arith.negf %481 : vector<8x96xf32>
    %483 = math.exp %482 : vector<8x96xf32>
    %cst_128 = arith.constant 1.000000e+00 : f32
    %484 = vector.broadcast %cst_128 : f32 to vector<8x96xf32>
    %485 = arith.addf %484, %483 : vector<8x96xf32>
    %486 = arith.divf %484, %485 : vector<8x96xf32>
    %487 = vector.extract_strided_slice %475 {offsets = [0, 96], sizes = [8, 32], strides = [1, 1]} : vector<8x128xf32> to vector<8x32xf32>
    %488 = math.tanh %487 : vector<8x32xf32>
    %489 = vector.extract_strided_slice %486 {offsets = [0, 0], sizes = [8, 32], strides = [1, 1]} : vector<8x96xf32> to vector<8x32xf32>
    %490 = vector.extract_strided_slice %486 {offsets = [0, 32], sizes = [8, 32], strides = [1, 1]} : vector<8x96xf32> to vector<8x32xf32>
    %491 = vector.extract_strided_slice %486 {offsets = [0, 64], sizes = [8, 32], strides = [1, 1]} : vector<8x96xf32> to vector<8x32xf32>
    %492 = arith.mulf %490, %463 : vector<8x32xf32>
    %493 = arith.mulf %489, %488 : vector<8x32xf32>
    %494 = arith.addf %492, %493 : vector<8x32xf32>
    %495 = math.tanh %494 : vector<8x32xf32>
    %496 = arith.mulf %491, %495 : vector<8x32xf32>
    %497 = vector.extract_strided_slice %480 {offsets = [0, 0], sizes = [8, 96], strides = [1, 1]} : vector<8x128xf32> to vector<8x96xf32>
    %498 = arith.negf %497 : vector<8x96xf32>
    %499 = math.exp %498 : vector<8x96xf32>
    %cst_129 = arith.constant 1.000000e+00 : f32
    %500 = vector.broadcast %cst_129 : f32 to vector<8x96xf32>
    %501 = arith.addf %500, %499 : vector<8x96xf32>
    %502 = arith.divf %500, %501 : vector<8x96xf32>
    %503 = vector.extract_strided_slice %480 {offsets = [0, 96], sizes = [8, 32], strides = [1, 1]} : vector<8x128xf32> to vector<8x32xf32>
    %504 = math.tanh %503 : vector<8x32xf32>
    %505 = vector.extract_strided_slice %502 {offsets = [0, 0], sizes = [8, 32], strides = [1, 1]} : vector<8x96xf32> to vector<8x32xf32>
    %506 = vector.extract_strided_slice %502 {offsets = [0, 32], sizes = [8, 32], strides = [1, 1]} : vector<8x96xf32> to vector<8x32xf32>
    %507 = vector.extract_strided_slice %502 {offsets = [0, 64], sizes = [8, 32], strides = [1, 1]} : vector<8x96xf32> to vector<8x32xf32>
    %508 = arith.mulf %506, %469 : vector<8x32xf32>
    %509 = arith.mulf %505, %504 : vector<8x32xf32>
    %510 = arith.addf %508, %509 : vector<8x32xf32>
    %511 = math.tanh %510 : vector<8x32xf32>
    %512 = arith.mulf %507, %511 : vector<8x32xf32>
    %513 = arith.index_cast %c7_i32_120 : i32 to index
    %c0_130 = arith.constant 0 : index
    %c0_131 = arith.constant 0 : index
    %514 = vector.load %arg1[%513, %c0_130, %c0_131] : memref<8x8x1xf32, #tpu.memory_space<vmem>>, vector<1x8x1xf32>
    %515 = vector.shape_cast %514 : vector<1x8x1xf32> to vector<8x1xf32>
    %cst_132 = arith.constant 5.000000e-01 : f32
    %516 = vector.broadcast %cst_132 : f32 to vector<8x1xf32>
    %517 = arith.cmpf ogt, %515, %516 : vector<8x1xf32>
    %518 = arith.index_cast %470 : i32 to index
    %c0_133 = arith.constant 0 : index
    %c0_134 = arith.constant 0 : index
    %519 = vector.load %arg1[%518, %c0_133, %c0_134] : memref<8x8x1xf32, #tpu.memory_space<vmem>>, vector<1x8x1xf32>
    %520 = vector.shape_cast %519 : vector<1x8x1xf32> to vector<8x1xf32>
    %cst_135 = arith.constant 5.000000e-01 : f32
    %521 = vector.broadcast %cst_135 : f32 to vector<8x1xf32>
    %522 = arith.cmpf ogt, %520, %521 : vector<8x1xf32>
    %523 = vector.shape_cast %517 : vector<8x1xi1> to vector<8x1xi1>
    %524 = vector.broadcast %523 : vector<8x1xi1> to vector<8x32xi1>
    %525 = arith.select %524, %496, %460 : vector<8x32xi1>, vector<8x32xf32>
    %526 = vector.shape_cast %517 : vector<8x1xi1> to vector<8x1xi1>
    %527 = vector.broadcast %526 : vector<8x1xi1> to vector<8x32xi1>
    %528 = arith.select %527, %494, %463 : vector<8x32xi1>, vector<8x32xf32>
    %529 = vector.shape_cast %522 : vector<8x1xi1> to vector<8x1xi1>
    %530 = vector.broadcast %529 : vector<8x1xi1> to vector<8x32xi1>
    %531 = arith.select %530, %512, %466 : vector<8x32xi1>, vector<8x32xf32>
    %532 = vector.shape_cast %522 : vector<8x1xi1> to vector<8x1xi1>
    %533 = vector.broadcast %532 : vector<8x1xi1> to vector<8x32xi1>
    %534 = arith.select %533, %510, %469 : vector<8x32xi1>, vector<8x32xf32>
    %c8_i32 = arith.constant 8 : i32
    %535 = tpu.concatenate %525, %531 in 1 : vector<8x32xf32>, vector<8x32xf32> -> vector<8x64xf32>
    %c0_136 = arith.constant 0 : index
    %c0_137 = arith.constant 0 : index
    %536 = vector.load %arg6[%c0_136, %c0_137] : memref<64x128xf32, #tpu.memory_space<vmem>>, vector<64x128xf32>
    %cst_138 = arith.constant dense<0.000000e+00> : vector<8x128xf32>
    %537 = tpu.matmul %535, %536, %cst_138 {dimension_numbers = #tpu.dot_dimension_numbers<[1], [0], [0], [1], [0, 0, 1, 1], [], []>} : vector<8x64xf32>, vector<64x128xf32>, vector<8x128xf32> -> vector<8x128xf32>
    %c0_139 = arith.constant 0 : index
    %c0_140 = arith.constant 0 : index
    %538 = vector.load %arg7[%c0_139, %c0_140] : memref<1x128xf32, #tpu.memory_space<vmem>>, vector<1x128xf32>
    %539 = vector.broadcast %538 : vector<1x128xf32> to vector<8x128xf32>
    %540 = arith.addf %537, %539 : vector<8x128xf32>
    %541 = arith.negf %540 : vector<8x128xf32>
    %542 = math.exp %541 : vector<8x128xf32>
    %cst_141 = arith.constant 1.000000e+00 : f32
    %543 = vector.broadcast %cst_141 : f32 to vector<8x128xf32>
    %544 = arith.addf %543, %542 : vector<8x128xf32>
    %545 = arith.divf %543, %544 : vector<8x128xf32>
    %c0_142 = arith.constant 0 : index
    %c0_143 = arith.constant 0 : index
    %546 = vector.load %arg8[%c0_142, %c0_143] : memref<8x128xf32, #tpu.memory_space<vmem>>, vector<8x128xf32>
    tpu.vector_store %arg8[%c0_142, %c0_143], %545 {strides = array<i32>} : memref<8x128xf32, #tpu.memory_space<vmem>>, vector<8x128xf32>,
    return
  }
}

</mosaic_0001>

<bundles_post_ra>
// kernel: tpu_custom_call.1
= control target key start
LH: loop header
LB: loop body
LE: loop exit
PB: predicated region body
PF: predicated region fallthrough
CT: control target
= control target key end

     0   :  { %13 = vsyncpa [#allocation5], 0  ;;  %s3368_s0 = inlined_call_operand.vmem [shape: bf16[64,32], index: 0, kind: input, shape index: {}]   ;;  %s3369_s1 = inlined_call_operand.vmem [shape: f32[8,8,1], index: 1, kind: input, shape index: {}]   ;;  %s3370_s2 = inlined_call_operand.vmem [shape: bf16[32,256], index: 2, kind: input, shape index: {}]   ;;  %s3371_s3 = inlined_call_operand.vmem [shape: f32[1,256], index: 3, kind: input, shape index: {}]   ;;  %s3372_s4 = inlined_call_operand.vmem [shape: f32[32,128], index: 4, kind: input, shape index: {}]   ;;  %s3373_s5 = inlined_call_operand.hbm [shape: f32[32,128], index: 5, kind: input, shape index: {}]   ;;  %s3374_s6 = inlined_call_operand.vmem [shape: f32[64,128], index: 6, kind: input, shape index: {}]   ;;  %s3375_s7 = inlined_call_operand.vmem [shape: f32[1,128], index: 7, kind: input, shape index: {}]   ;;  %s3376_s8 = inlined_call_operand.hbm [shape: f32[8,128], index: 8, kind: output, shape index: {}]  }
   0x1   :  { %14 = vsyncpa [#allocation6], 0  ;;  %s2706_s27 = smov [#allocation4]   ;;  %s2658_s9 = scalar_lea.hbm %s3373_s5, 512 }
   0x2   :  { %s30_s28 = sshll.u32 %s2706_s27, 4  ;;  %p2659_p0 = scmp.ne.s32.totalorder %s3373_s5, %s2658_s9  ;;  %s31_s28 = int_to_ptr.vmem [resolvable:$true] %s30_s28 }
   0x3   :  { %p2662_p1 = scmp.lt.u32.totalorder %s2658_s9, %s3373_s5 }
   0x5   :  { %p2664_p2 = pnand %p2662_p1, %p2659_p0 }
   0x7   :  { %2667 = shalt.err (!%p2664_p2)
}
   0x8   :  { %s2668_s14 = scalar_lea.vmem %s31_s28, 512  ;;  %p2673_p4 = scmp.lt.s32.totalorder %s31_s28, %s31_s28 }
   0x9   :  { %p2669_p3 = scmp.ne.s32.totalorder %s31_s28, %s2668_s14  ;;  %p2674_p5 = scmp.lt.s32.totalorder %s2668_s14, %s2668_s14 }
   0xb   :  { %p2675_p6 = por %p2674_p5, %p2673_p4 }
   0xd   :  { %p2676_p7 = pnand %p2675_p6, %p2669_p3 }
   0xf   :  { %2679 = shalt.err (!%p2676_p7)
}
  0x10   :  { %s2707_s15 = smov 128   ;;  %s2708_s16 = smov 8  }
  0x11   :  { %36 = dma.hbm_to_vmem [thread:$0]  %s3373_s5, 512, %s31_s28, [#allocation5], %s2707_s15, %s2707_s15, %s2708_s16  }
  0x12   :  { %2702 = dma.done.wait [#allocation5], 512  }
  0x13   :  { %2703 = vsyncadd [#allocation5], 4294966784  ;;  %v2709_v0 = vmov 0   ;;  %v2516_v1 = vld [vmem:[%s3370_s2 + $0x4] ss:$8 sps:$4 sm:$0xff]   ;;  %v2522_v7 = vld [vmem:[%s3368_s0 + $0x18] sm:$0xff]   ;;  %v59_v21 = vlaneseq }
  0x14   :  { %184 = vmatprep.mubr.bf16.mxu1 %v2709_v0  ;;  %154 = vmatprep.mubr.bf16.mxu0 %v2709_v0  ;;  %v2518_v2 = vld [vmem:[%s3370_s2] ss:$8 sps:$4 sm:$0xff]   ;;  %v2519_v3 = vld [vmem:[%s3370_s2 + $0x14] ss:$8 sps:$4 sm:$0xff]   ;;  %v2521_v4 = vld [vmem:[%s3370_s2 + $0x10] ss:$8 sps:$4 sm:$0xff]  }
  0x15   :  { %2514 = vset.pattern.permute.xlu0 %v2709_v0  ;;  %2515 = vset.pattern.permute.xlu1 %v2709_v0  ;;  %v211_v5 = vld [vmem:[%s3372_s4] sm:$0xff]  ;;  %v212_v6 = vld [vmem:[%s3372_s4 + $0x8] sm:$0xff]  ;;  %vm109_vm0 = vcmask 261120   ;;  %v213_v10 = vld [vmem:[%s3372_s4 + $0x10] sm:$0xff]  ;;  %v2710_v12 = vmov 0.0|0.0   ;;  %vm2711_vm1 = vmmov 0  }
  0x16   :  { %2499 = vmatprep.subr.bf16.mxu1 %v2516_v1  ;;  %122 = vmatprep.subr.bf16.mxu0 %v2516_v1  ;;  %v2523_v8 = vld [vmem:[%s3368_s0] sm:$0xff]   ;;  %v2802_v9 = vpack.c.bf16 %v212_v6, %v211_v5  ;;  %v214_v11 = vld [vmem:[%s3372_s4 + $0x18] sm:$0xff]  ;;  %v2712_v14 = vmov 0.0   ;;  %v216_v16 = vld [vmem:[#allocation4 + $0x8] sm:$0xff]  ;;  %v60_v22 = vshrl.u32 %v59_v21, 7  ;;  %s2714_s20 = smov 64  }
  0x17   :  { %2501 = vmatpush1.bf16.msra.mxu1 %v2518_v2  ;;  %123 = vmatpush1.bf16.msra.mxu0 %v2518_v2  ;;  %v2815_v13 = vpack.c.bf16 %v214_v11, %v213_v10  ;;  %v215_v15 = vld [vmem:[#allocation4] sm:$0xff]  ;;  %v217_v18 = vld [vmem:[#allocation4 + $0x10] sm:$0xff]  ;;  %v218_v19 = vld [vmem:[#allocation4 + $0x18] sm:$0xff] }
  0x18   :  { %2500 = vmatprep.subr.bf16.mxu1 %v2519_v3  ;;  %124 = vmatprep.subr.bf16.mxu0 %v2519_v3  ;;  %v2824_v17 = vpack.c.bf16 %v216_v16, %v215_v15  ;;  %v2831_v20 = vpack.c.bf16 %v218_v19, %v217_v18  ;;  %v61_v23 = vsub.s32 0, %v60_v22  ;;  %v57_v24 = vld [vmem:[%s3371_s3] sm:$0x3]  ;;  %v65_v36 = vsub.s32 1, %v60_v22  ;;  %s2713_s3 = smov 32   ;;  %v2069_v3 = vld [vmem:[%s3369_s1 + $0x38] sm:$0xff] }
  0x19   :  { %v415_v45 = vld [vmem:[%s3369_s1] sm:$0xff]  ;;  %vm419_vm3 = vcmp.gt.f32.partialorder %v2069_v3, 0.5 }
  0x1a   :  { %v2858_v31 = vrot.slane %v57_v24, %v61_v23  ;;  %v2863_v39 = vrot.slane %v57_v24, %v65_v36  ;;  %vm416_vm2 = vcmp.gt.f32.partialorder %v415_v45, 0.5  ;;  %v427_v5 = vsel %vm419_vm3, 1, %v2709_v0 }
  0x1b   :  { %2502 = vmatpush1.bf16.msra.mxu1 %v2521_v4  ;;  %125 = vmatpush1.bf16.msra.mxu0 %v2521_v4  ;;  %v420_v47 = vsel %vm416_vm2, 1, %v2709_v0 }
  0x1c   :  { %2391 = vmatprep.subr.bf16.mxu1 %v2710_v12  ;;  %2415 = vmatprep.subr.bf16.mxu0 %v2710_v12 }
  0x1e   :  { %2066 = vmatmul.mubr.msk.bf16.vlgmr.msra.gmra.mrb[0].mxu1 %vm109_vm0, %v2522_v7  ;;  %2063 = vmatmul.mubr.msk.bf16.vlgmr.msra.gmra.mrb[0].mxu0 %vm109_vm0, %v2523_v8 }
  0x1f   :  { %2393 = vmatpush3.bf16.msra.mxu1 %v2802_v9  ;;  %2204 = vmatprep.mubr.msk.f32.mxu1 %vm2711_vm1, %v2712_v14 }
  0x20   :  { %2394 = vmatprep.subr.bf16.mxu1 %v2710_v12  ;;  %164 = vmatprep.mubr.bf16.mxu0 %v2709_v0 }
  0x21   :  { %2417 = vmatpush3.bf16.msra.mxu0 %v2802_v9 }
  0x22   :  { %2418 = vmatprep.subr.bf16.mxu0 %v2710_v12 }
  0x23   :  { %2396 = vmatpush3.bf16.msra.mxu1 %v2815_v13 }
  0x24   :  { %2397 = vmatprep.subr.bf16.mxu1 %v2710_v12 }
  0x25   :  { %2420 = vmatpush3.bf16.msra.mxu0 %v2815_v13 }
  0x26   :  { %2205 = vmatmul.mubr.f32.vlgmr.msra.gmra.mrb[4].mxu1 %v2712_v14  ;;  %2427 = vmatprep.subr.bf16.mxu0 %v2710_v12 }
  0x27   :  { %2399 = vmatpush3.bf16.msra.mxu1 %v2824_v17  ;;  %2215 = vmatprep.mubr.msk.f32.mxu1 %vm2711_vm1, %v2712_v14 }
  0x28   :  { %2400 = vmatprep.subr.bf16.mxu1 %v2710_v12 }
  0x2b   :  { %2402 = vmatpush3.bf16.msra.mxu1 %v2831_v20 }
  0x2c   :  { %2403 = vmatprep.subr.bf16.mxu1 %v2710_v12 }
  0x2e   :  { %2216 = vmatmul.mubr.f32.vlgmr.msra.gmra.mrb[6].mxu1 %v2712_v14 }
  0x2f   :  { %2405 = vmatpush3.bf16.msra.mxu1 %v2802_v9  ;;  %2226 = vmatprep.mubr.msk.f32.mxu1 %vm2711_vm1, %v2712_v14 }
  0x30   :  { %2406 = vmatprep.subr.bf16.mxu1 %v2710_v12 }
  0x33   :  { %2408 = vmatpush3.bf16.msra.mxu1 %v2815_v13 }
  0x34   :  { %2409 = vmatprep.subr.bf16.mxu1 %v2710_v12 }
  0xf1   :  { %v2848_v25 = vpop.f32.mrb[0].mxu1  ;;  %v156_v26 = vpop.f32.mrb[0].mxu0 }
  0xf2   :  { %v2850_v27 = vpop.f32.mrb[1].mxu1  ;;  %v2852_v28 = vpop.f32.mrb[1].mxu0  ;;  %v157_v34 = vadd.f32 %v156_v26, %v2858_v31 }
  0xf3   :  { %v2854_v29 = vpop.f32.mrb[2].mxu1  ;;  %v2856_v30 = vpop.f32.mrb[2].mxu0 }
  0xf4   :  { %v192_v32 = vpop.f32.mrb[3].mxu1  ;;  %v2860_v33 = vpop.f32.mrb[3].mxu0  ;;  %v161_v23 = vadd.f32 %v2856_v30, %v2858_v31 }
  0xf5   :  { %v193_v40 = vadd.f32 %v192_v32, %v2863_v39 }
  0xf9   :  { %v289_v35 = vpop.f32.mrb[4].mxu1 }
  0xfa   :  { %v293_v37 = vadd.f32 %v289_v35, %v157_v34  ;;  %v2206_v38 = vpop.f32.mrb[5].mxu1  ;;  %v189_v35 = vadd.f32 %v2850_v27, %v2863_v39 }
  0xfc   :  { %2526 = vtanh.f32 %v293_v37  ;;  %v2067_v48 = vmul.f32 -1.442695, %v293_v37 }
 0x101   :  { %v362_v41 = vpop.f32.mrb[6].mxu1 }
 0x102   :  { %v366_v42 = vadd.f32 %v362_v41, %v193_v40  ;;  %v2217_v43 = vpop.f32.mrb[7].mxu1 }
 0x104   :  { %2528 = vtanh.f32 %v366_v42  ;;  %v2068_v49 = vmul.f32 -1.442695, %v366_v42 }
 0x105   :  { %2530 = vpow2.f32 %v2067_v48 }
 0x106   :  { %v2527_v44 = vpop.eup %2526  ;;  %2532 = vpow2.f32 %v2068_v49 }
 0x107   :  { %376 = vrot.lane.b32.xlu0 %v2527_v44, %s2713_s3  ;;  %v2074_v44 = vld [vmem:[%s3369_s1 + $0x8] sm:$0xff] }
 0x108   :  { %vm640_vm6 = vcmp.gt.f32.partialorder %v2074_v44, 0.5 }
 0x109   :  { %v644_v49 = vsel %vm640_vm6, 1, %v2709_v0 }
 0x10e   :  { %v2529_v46 = vpop.eup %2528 }
 0x10f   :  { %400 = vrot.lane.b32.xlu0 %v2529_v46, %s2713_s3  ;;  %v2531_v50 = vpop.eup %2530 }
 0x110   :  { %v370_v51 = vadd.f32 1.0, %v2531_v50  ;;  %v2533_v52 = vpop.eup %2532  ;;  %v2075_v50 = vld [vmem:[%s3369_s1 + $0x30] sm:$0xff] }
 0x111   :  { %v394_v53 = vadd.f32 1.0, %v2533_v52  ;;  %vm643_vm7 = vcmp.gt.f32.partialorder %v2075_v50, 0.5  ;;  %v2080_v50 = vld [vmem:[%s3369_s1 + $0x10] sm:$0xff] }
 0x112   :  { %2534 = vrcp.f32 %v370_v51  ;;  %vm864_vm10 = vcmp.gt.f32.partialorder %v2080_v50, 0.5 }
 0x113   :  { %422 = vperm.xlu0 %2514, %v420_v47   ;;  %2536 = vrcp.f32 %v394_v53 }
 0x11c   :  { %v2535_v54 = vpop.eup %2534 }
 0x11d   :  { %v2537_v57 = vpop.eup %2536  ;;  %v374_v60 = vmul.f32 0.0, %v2535_v54 }
 0x11e   :  { %v398_v63 = vmul.f32 0.0, %v2537_v57 }
 0x179   :  { %v377_v55 = vpop.permute.xlu0 %376 }
 0x17a   :  { %v379_v56 = vmul.f32 %v2535_v54, %v377_v55 }
 0x17c   :  { %381 = vrot.lane.b32.xlu1 %v379_v56, %s2713_s3 }
 0x181   :  { %v401_v58 = vpop.permute.xlu0 %400 }
 0x182   :  { %v403_v59 = vmul.f32 %v2537_v57, %v401_v58 }
 0x184   :  { %405 = vrot.lane.b32.xlu1 %v403_v59, %s2713_s3 }
 0x192   :  { %v2886_v7 = vpop.permute.xlu0 %422 }
 0x193   :  { %vm424_vm4 = vcmp.eq.s32.totalorder %v2886_v7, 1 }
 0x1ee   :  { %v382_v61 = vpop.permute.xlu1 %381 }
 0x1ef   :  { %v2874_v62 = vadd.f32 %v382_v61, %v374_v60 }
 0x1f1   :  { %2538 = vtanh.f32 %v2874_v62  ;;  %v2937_v55 = vsel %vm424_vm4, %v2874_v62, 0.0 }
 0x1f6   :  { %v406_v1 = vpop.permute.xlu1 %405 }
 0x1f7   :  { %v2877_v2 = vadd.f32 %v406_v1, %v398_v63  ;;  %v2524_v1 = vld [vmem:[%s3368_s0 + $0x8] sm:$0xff]  }
 0x1f8   :  { %2064 = vmatmul.mubr.msk.bf16.gmra.mrb[4].mxu0 %vm109_vm0, %v2524_v1 }
 0x1f9   :  { %2540 = vtanh.f32 %v2877_v2  ;;  %174 = vmatprep.mubr.bf16.mxu0 %v2709_v0 }
 0x1fb   :  { %v2539_v4 = vpop.eup %2538 }
 0x1fc   :  { %387 = vrot.lane.b32.xlu1 %v2539_v4, %s2713_s3 }
 0x200   :  { %429 = vperm.xlu1 %2515, %v427_v5  }
 0x203   :  { %v2541_v6 = vpop.eup %2540 }
 0x204   :  { %411 = vrot.lane.b32.xlu0 %v2541_v6, %s2713_s3 }
 0x26e   :  { %v388_v8 = vpop.permute.xlu1 %387 }
 0x26f   :  { %v390_v10 = vmul.f32 %v2535_v54, %v388_v8  ;;  %v651_v54 = vsel %vm643_vm7, 1, %v2709_v0 }
 0x271   :  { %v2891_v11 = vsel %vm424_vm4, %v390_v10, 0.0 }
 0x272   :  { %437 = vrot.lane.b32.xlu1 %v2891_v11, %s2714_s20 }
 0x276   :  { %v412_v15 = vpop.permute.xlu0 %411 }
 0x277   :  { %v414_v16 = vmul.f32 %v2537_v57, %v412_v15 }
 0x27f   :  { %v2895_v18 = vpop.permute.xlu1 %429 }
 0x280   :  { %vm431_vm5 = vcmp.eq.s32.totalorder %v2895_v18, 1  ;;  %v2104_v18 = vld [vmem:[%s3375_s7] ss:$0 sm:$0xff] }
 0x281   :  { %v2900_v19 = vsel %vm431_vm5, %v414_v16, 0.0  ;;  %v2946_v60 = vsel %vm431_vm5, %v2877_v2, 0.0  ;;  %v2525_v2 = vld [vmem:[%s3368_s0 + $0x10] sm:$0xff]  }
 0x282   :  { %515 = vrot.lane.b32.xlu0 %v2900_v19, %s2714_s20  ;;  %2065 = vmatmul.mubr.msk.bf16.gmra.mrb[8].mxu0 %vm109_vm0, %v2525_v2 }
 0x283   :  { %2248 = vmatprep.mubr.msk.f32.mxu0 %vm2711_vm1, %v2712_v14 }
 0x2e4   :  { %v438_v21 = vpop.permute.xlu1 %437 }
 0x2e5   :  { %2227 = vmatmul.mubr.msk.f32.vlgmr.msra.gmra.mrb[8].mxu1 %vm109_vm0, %v438_v21 }
 0x2e6   :  { %2411 = vmatpush3.bf16.msra.mxu1 %v2824_v17  ;;  %2237 = vmatprep.mubr.msk.f32.mxu1 %vm2711_vm1, %v2712_v14 }
 0x2e7   :  { %2412 = vmatprep.subr.bf16.mxu1 %v2710_v12 }
 0x2ea   :  { %2414 = vmatpush3.bf16.msra.mxu1 %v2831_v20 }
 0x2eb   :  { %2421 = vmatprep.subr.bf16.mxu1 %v2710_v12 }
 0x2f4   :  { %v516_v22 = vpop.permute.xlu0 %515 }
 0x2f5   :  { %2238 = vmatmul.mubr.msk.f32.vlgmr.msra.gmra.mrb[10].mxu1 %vm109_vm0, %v516_v22  ;;  %v166_v22 = vpop.f32.mrb[4].mxu0 }
 0x2f6   :  { %2423 = vmatpush3.bf16.msra.mxu1 %v2824_v17  ;;  %2259 = vmatprep.mubr.msk.f32.mxu1 %vm2711_vm1, %v2712_v14 }
 0x2f7   :  { %2424 = vmatprep.subr.bf16.mxu1 %v2710_v12 }
 0x2fa   :  { %2426 = vmatpush3.bf16.msra.mxu1 %v2831_v20 }
 0x2fb   :  { %2433 = vmatprep.subr.bf16.mxu1 %v2710_v12 }
 0x3b8   :  { %v507_v24 = vpop.f32.mrb[8].mxu1 }
 0x3b9   :  { %v511_v26 = vadd.f32 %v507_v24, %v161_v23  ;;  %v2228_v32 = vpop.f32.mrb[9].mxu1 }
 0x3bb   :  { %2542 = vtanh.f32 %v511_v26  ;;  %v2072_v41 = vmul.f32 -1.442695, %v511_v26 }
 0x3c5   :  { %v2543_v34 = vpop.eup %2542 }
 0x3c6   :  { %599 = vrot.lane.b32.xlu1 %v2543_v34, %s2713_s3 }
 0x3c8   :  { %v585_v36 = vpop.f32.mrb[10].mxu1 }
 0x3c9   :  { %v589_v37 = vadd.f32 %v585_v36, %v189_v35  ;;  %v2239_v38 = vpop.f32.mrb[11].mxu1 }
 0x3cb   :  { %2544 = vtanh.f32 %v589_v37  ;;  %v2073_v42 = vmul.f32 -1.442695, %v589_v37  ;;  %v167_v37 = vadd.f32 %v166_v22, %v2858_v31 }
 0x3cc   :  { %2546 = vpow2.f32 %v2072_v41 }
 0x3cd   :  { %2548 = vpow2.f32 %v2073_v42 }
 0x3d5   :  { %v2545_v40 = vpop.eup %2544 }
 0x3d6   :  { %623 = vrot.lane.b32.xlu0 %v2545_v40, %s2713_s3  ;;  %v2547_v30 = vpop.eup %2546 }
 0x3d7   :  { %v593_v43 = vadd.f32 1.0, %v2547_v30  ;;  %v2549_v45 = vpop.eup %2548 }
 0x3d8   :  { %v617_v48 = vadd.f32 1.0, %v2549_v45 }
 0x3d9   :  { %2550 = vrcp.f32 %v593_v43 }
 0x3da   :  { %2552 = vrcp.f32 %v617_v48 }
 0x3e3   :  { %v2551_v27 = vpop.eup %2550 }
 0x3e4   :  { %v2553_v51 = vpop.eup %2552  ;;  %v597_v56 = vmul.f32 %v2551_v27, %v2937_v55 }
 0x3e5   :  { %v621_v61 = vmul.f32 %v2553_v51, %v2946_v60 }
 0x438   :  { %v600_v46 = vpop.permute.xlu1 %599 }
 0x439   :  { %v602_v47 = vmul.f32 %v2551_v27, %v600_v46 }
 0x43b   :  { %604 = vrot.lane.b32.xlu1 %v602_v47, %s2713_s3 }
 0x43f   :  { %646 = vperm.xlu1 %2515, %v644_v49  }
 0x448   :  { %v624_v52 = vpop.permute.xlu0 %623 }
 0x449   :  { %v626_v53 = vmul.f32 %v2553_v51, %v624_v52 }
 0x44b   :  { %628 = vrot.lane.b32.xlu0 %v626_v53, %s2713_s3 }
 0x44f   :  { %653 = vperm.xlu0 %2514, %v651_v54  }
 0x4ad   :  { %v605_v57 = vpop.permute.xlu1 %604 }
 0x4ae   :  { %v2940_v58 = vadd.f32 %v605_v57, %v597_v56  ;;  %v868_v57 = vsel %vm864_vm10, 1, %v2709_v0 }
 0x4b0   :  { %2554 = vtanh.f32 %v2940_v58 }
 0x4ba   :  { %v2555_v59 = vpop.eup %2554 }
 0x4bb   :  { %610 = vrot.lane.b32.xlu1 %v2555_v59, %s2713_s3  ;;  %v2081_v59 = vld [vmem:[%s3369_s1 + $0x28] sm:$0xff] }
 0x4bc   :  { %vm867_vm11 = vcmp.gt.f32.partialorder %v2081_v59, 0.5 }
 0x4bd   :  { %v629_v63 = vpop.permute.xlu0 %628  ;;  %v875_v2 = vsel %vm867_vm11, 1, %v2709_v0 }
 0x4be   :  { %v2950_v62 = vadd.f32 %v629_v63, %v621_v61  ;;  %v2965_v4 = vpop.permute.xlu1 %646 }
 0x4bf   :  { %vm648_vm8 = vcmp.eq.s32.totalorder %v2965_v4, 1  ;;  %v1946_v4 = vld [vmem:[%s3374_s6 + $0x10] sm:$0xff] }
 0x4c0   :  { %2556 = vtanh.f32 %v2950_v62 }
 0x4ca   :  { %v2557_v3 = vpop.eup %2556 }
 0x4cb   :  { %634 = vrot.lane.b32.xlu0 %v2557_v3, %s2713_s3  ;;  %v3029_v3 = vsel %vm648_vm8, %v2940_v58, %v2937_v55 }
 0x4ce   :  { %v2975_v10 = vpop.permute.xlu0 %653 }
 0x4cf   :  { %vm655_vm9 = vcmp.eq.s32.totalorder %v2975_v10, 1  ;;  %v1944_v10 = vld [vmem:[%s3374_s6] sm:$0xff] }
 0x4d0   :  { %v3040_v22 = vsel %vm655_vm9, %v2950_v62, %v2946_v60 }
 0x52d   :  { %v611_v5 = vpop.permute.xlu1 %610 }
 0x52e   :  { %v613_v6 = vmul.f32 %v2551_v27, %v611_v5 }
 0x530   :  { %v2971_v8 = vsel %vm648_vm8, %v613_v6, %v2891_v11  ;;  %v2985_v11 = vpop.f32.mrb[5].mxu0 }
 0x531   :  { %661 = vrot.lane.b32.xlu1 %v2971_v8, %s2714_s20  ;;  %v2987_v23 = vpop.f32.mrb[6].mxu0 }
 0x532   :  { %v2989_v24 = vpop.f32.mrb[7].mxu0 }
 0x533   :  { %v2991_v26 = vpop.f32.mrb[8].mxu0 }
 0x534   :  { %v2993_v32 = vpop.f32.mrb[9].mxu0 }
 0x535   :  { %v2995_v34 = vpop.f32.mrb[10].mxu0 }
 0x536   :  { %v182_v35 = vpop.f32.mrb[11].mxu0 }
 0x537   :  { %v183_v42 = vadd.f32 %v182_v35, %v2863_v39 }
 0x53d   :  { %v635_v15 = vpop.permute.xlu0 %634 }
 0x53e   :  { %v637_v16 = vmul.f32 %v2553_v51, %v635_v15 }
 0x540   :  { %v2981_v21 = vsel %vm655_vm9, %v637_v16, %v2900_v19 }
 0x541   :  { %739 = vrot.lane.b32.xlu0 %v2981_v21, %s2714_s20 }
 0x5a3   :  { %v662_v36 = vpop.permute.xlu1 %661 }
 0x5a4   :  { %2249 = vmatmul.mubr.msk.f32.vlgmr.msra.gmra.mrb[12].mxu0 %vm109_vm0, %v662_v36 }
 0x5a5   :  { %2429 = vmatpush3.bf16.msra.mxu0 %v2802_v9  ;;  %2270 = vmatprep.mubr.msk.f32.mxu0 %vm2711_vm1, %v2712_v14 }
 0x5a6   :  { %2430 = vmatprep.subr.bf16.mxu0 %v2710_v12 }
 0x5a9   :  { %2432 = vmatpush3.bf16.msra.mxu0 %v2815_v13 }
 0x5aa   :  { %2439 = vmatprep.subr.bf16.mxu0 %v2710_v12 }
 0x5b3   :  { %v740_v19 = vpop.permute.xlu0 %739 }
 0x5b4   :  { %2260 = vmatmul.mubr.msk.f32.vlgmr.msra.gmra.mrb[12].mxu1 %vm109_vm0, %v740_v19 }
 0x5b5   :  { %2435 = vmatpush3.bf16.msra.mxu1 %v2824_v17  ;;  %2281 = vmatprep.mubr.msk.f32.mxu1 %vm2711_vm1, %v2712_v14 }
 0x5b6   :  { %2436 = vmatprep.subr.bf16.mxu1 %v2710_v12 }
 0x5b9   :  { %2438 = vmatpush3.bf16.msra.mxu1 %v2831_v20 }
 0x5ba   :  { %2445 = vmatprep.subr.bf16.mxu1 %v2710_v12 }
 0x677   :  { %v731_v38 = vpop.f32.mrb[12].mxu0 }
 0x678   :  { %v735_v40 = vadd.f32 %v731_v38, %v167_v37  ;;  %v2250_v41 = vpop.f32.mrb[13].mxu0 }
 0x67a   :  { %2558 = vtanh.f32 %v735_v40  ;;  %v2078_v46 = vmul.f32 -1.442695, %v735_v40 }
 0x684   :  { %v2559_v30 = vpop.eup %2558 }
 0x685   :  { %823 = vrot.lane.b32.xlu1 %v2559_v30, %s2713_s3 }
 0x687   :  { %v809_v43 = vpop.f32.mrb[12].mxu1 }
 0x688   :  { %v813_v44 = vadd.f32 %v809_v43, %v183_v42  ;;  %v2261_v45 = vpop.f32.mrb[13].mxu1 }
 0x68a   :  { %2560 = vtanh.f32 %v813_v44  ;;  %v2079_v48 = vmul.f32 -1.442695, %v813_v44 }
 0x68b   :  { %2562 = vpow2.f32 %v2078_v46  ;;  %v179_v46 = vadd.f32 %v2993_v32, %v2863_v39 }
 0x68c   :  { %2564 = vpow2.f32 %v2079_v48 }
 0x694   :  { %v2561_v27 = vpop.eup %2560 }
 0x695   :  { %847 = vrot.lane.b32.xlu0 %v2561_v27, %s2713_s3  ;;  %v2563_v47 = vpop.eup %2562 }
 0x696   :  { %v817_v49 = vadd.f32 1.0, %v2563_v47  ;;  %v2565_v51 = vpop.eup %2564 }
 0x697   :  { %v841_v56 = vadd.f32 1.0, %v2565_v51 }
 0x698   :  { %2566 = vrcp.f32 %v817_v49 }
 0x699   :  { %2568 = vrcp.f32 %v841_v56 }
 0x6a2   :  { %v2567_v52 = vpop.eup %2566 }
 0x6a3   :  { %v2569_v61 = vpop.eup %2568  ;;  %v821_v5 = vmul.f32 %v2567_v52, %v3029_v3 }
 0x6a4   :  { %v845_v35 = vmul.f32 %v2569_v61, %v3040_v22 }
 0x6f7   :  { %v824_v53 = vpop.permute.xlu1 %823 }
 0x6f8   :  { %v826_v54 = vmul.f32 %v2567_v52, %v824_v53 }
 0x6fa   :  { %828 = vrot.lane.b32.xlu1 %v826_v54, %s2713_s3  ;;  %v2086_v54 = vld [vmem:[%s3369_s1 + $0x18] sm:$0xff] }
 0x6fb   :  { %vm1088_vm14 = vcmp.gt.f32.partialorder %v2086_v54, 0.5 }
 0x6fe   :  { %870 = vperm.xlu1 %2515, %v868_v57  }
 0x707   :  { %v848_v63 = vpop.permute.xlu0 %847 }
 0x708   :  { %v850_v1 = vmul.f32 %v2569_v61, %v848_v63  ;;  %v1092_v63 = vsel %vm1088_vm14, 1, %v2709_v0 }
 0x70a   :  { %852 = vrot.lane.b32.xlu0 %v850_v1, %s2713_s3  ;;  %v2087_v1 = vld [vmem:[%s3369_s1 + $0x20] sm:$0xff] }
 0x70b   :  { %vm1091_vm15 = vcmp.gt.f32.partialorder %v2087_v1, 0.5 }
 0x70e   :  { %877 = vperm.xlu0 %2514, %v875_v2  }
 0x76c   :  { %v829_v6 = vpop.permute.xlu1 %828 }
 0x76d   :  { %v3032_v15 = vadd.f32 %v829_v6, %v821_v5 }
 0x76f   :  { %2570 = vtanh.f32 %v3032_v15 }
 0x779   :  { %v2571_v16 = vpop.eup %2570 }
 0x77a   :  { %834 = vrot.lane.b32.xlu1 %v2571_v16, %s2713_s3  ;;  %v1099_v16 = vsel %vm1091_vm15, 1, %v2709_v0 }
 0x77c   :  { %v853_v55 = vpop.permute.xlu0 %852 }
 0x77d   :  { %v3043_v58 = vadd.f32 %v853_v55, %v845_v35  ;;  %v3047_v19 = vpop.permute.xlu1 %870 }
 0x77e   :  { %vm872_vm12 = vcmp.eq.s32.totalorder %v3047_v19, 1 }
 0x77f   :  { %2572 = vtanh.f32 %v3043_v58  ;;  %v3101_v35 = vsel %vm872_vm12, %v3032_v15, %v3029_v3 }
 0x789   :  { %v2573_v36 = vpop.eup %2572 }
 0x78a   :  { %858 = vrot.lane.b32.xlu0 %v2573_v36, %s2713_s3 }
 0x78d   :  { %v3057_v62 = vpop.permute.xlu0 %877 }
 0x78e   :  { %vm879_vm13 = vcmp.eq.s32.totalorder %v3057_v62, 1 }
 0x78f   :  { %v3112_v0 = vsel %vm879_vm13, %v3043_v58, %v3040_v22 }
 0x7ec   :  { %v835_v37 = vpop.permute.xlu1 %834 }
 0x7ed   :  { %v837_v38 = vmul.f32 %v2567_v52, %v835_v37 }
 0x7ef   :  { %v3053_v60 = vsel %vm872_vm12, %v837_v38, %v2971_v8 }
 0x7f0   :  { %885 = vrot.lane.b32.xlu1 %v3053_v60, %s2714_s20 }
 0x7fc   :  { %v859_v40 = vpop.permute.xlu0 %858 }
 0x7fd   :  { %v861_v41 = vmul.f32 %v2569_v61, %v859_v40 }
 0x7ff   :  { %v3063_v30 = vsel %vm879_vm13, %v861_v41, %v2981_v21  ;;  %v171_v21 = vadd.f32 %v2987_v23, %v2858_v31 }
 0x800   :  { %963 = vrot.lane.b32.xlu0 %v3063_v30, %s2714_s20 }
 0x862   :  { %v886_v42 = vpop.permute.xlu1 %885 }
 0x863   :  { %2271 = vmatmul.mubr.msk.f32.vlgmr.msra.gmra.mrb[14].mxu0 %vm109_vm0, %v886_v42 }
 0x864   :  { %2441 = vmatpush3.bf16.msra.mxu0 %v2802_v9  ;;  %2292 = vmatprep.mubr.msk.f32.mxu0 %vm2711_vm1, %v2712_v14 }
 0x865   :  { %2442 = vmatprep.subr.bf16.mxu0 %v2710_v12 }
 0x868   :  { %2444 = vmatpush3.bf16.msra.mxu0 %v2815_v13 }
 0x869   :  { %2451 = vmatprep.subr.bf16.mxu0 %v2710_v12 }
 0x872   :  { %v964_v8 = vpop.permute.xlu0 %963 }
 0x873   :  { %2282 = vmatmul.mubr.msk.f32.vlgmr.msra.gmra.mrb[14].mxu1 %vm109_vm0, %v964_v8 }
 0x874   :  { %2447 = vmatpush3.bf16.msra.mxu1 %v2824_v17  ;;  %2303 = vmatprep.mubr.msk.f32.mxu1 %vm2711_vm1, %v2712_v14 }
 0x875   :  { %2448 = vmatprep.subr.bf16.mxu1 %v2710_v12 }
 0x878   :  { %2450 = vmatpush3.bf16.msra.mxu1 %v2831_v20 }
 0x879   :  { %2457 = vmatprep.subr.bf16.mxu1 %v2710_v12 }
 0x936   :  { %v955_v43 = vpop.f32.mrb[14].mxu0 }
 0x937   :  { %v959_v44 = vadd.f32 %v955_v43, %v171_v21  ;;  %v2272_v45 = vpop.f32.mrb[15].mxu0 }
 0x939   :  { %2574 = vtanh.f32 %v959_v44  ;;  %v2084_v51 = vmul.f32 -1.442695, %v959_v44 }
 0x943   :  { %v2575_v27 = vpop.eup %2574 }
 0x944   :  { %1047 = vrot.lane.b32.xlu1 %v2575_v27, %s2713_s3 }
 0x946   :  { %v1033_v47 = vpop.f32.mrb[14].mxu1 }
 0x947   :  { %v1037_v48 = vadd.f32 %v1033_v47, %v179_v46  ;;  %v2283_v49 = vpop.f32.mrb[15].mxu1 }
 0x949   :  { %2576 = vtanh.f32 %v1037_v48  ;;  %v2085_v52 = vmul.f32 -1.442695, %v1037_v48 }
 0x94a   :  { %2578 = vpow2.f32 %v2084_v51 }
 0x94b   :  { %2580 = vpow2.f32 %v2085_v52 }
 0x953   :  { %v2577_v50 = vpop.eup %2576 }
 0x954   :  { %1071 = vrot.lane.b32.xlu0 %v2577_v50, %s2713_s3  ;;  %v2579_v23 = vpop.eup %2578  ;;  %v173_v50 = vadd.f32 %v2989_v24, %v2863_v39 }
 0x955   :  { %v1041_v53 = vadd.f32 1.0, %v2579_v23  ;;  %v2581_v56 = vpop.eup %2580 }
 0x956   :  { %v1065_v61 = vadd.f32 1.0, %v2581_v56 }
 0x957   :  { %2582 = vrcp.f32 %v1041_v53 }
 0x958   :  { %2584 = vrcp.f32 %v1065_v61 }
 0x961   :  { %v2583_v32 = vpop.eup %2582 }
 0x962   :  { %v2585_v2 = vpop.eup %2584  ;;  %v1045_v55 = vmul.f32 %v2583_v32, %v3101_v35 }
 0x963   :  { %v1069_v40 = vmul.f32 %v2585_v2, %v3112_v0 }
 0x9b6   :  { %v1048_v57 = vpop.permute.xlu1 %1047 }
 0x9b7   :  { %v1050_v59 = vmul.f32 %v2583_v32, %v1048_v57 }
 0x9b9   :  { %1052 = vrot.lane.b32.xlu1 %v1050_v59, %s2713_s3 }
 0x9bd   :  { %1094 = vperm.xlu1 %2515, %v1092_v63  }
 0x9c6   :  { %v1072_v5 = vpop.permute.xlu0 %1071 }
 0x9c7   :  { %v1074_v6 = vmul.f32 %v2585_v2, %v1072_v5 }
 0x9c9   :  { %1076 = vrot.lane.b32.xlu0 %v1074_v6, %s2713_s3 }
 0x9cd   :  { %1101 = vperm.xlu0 %2514, %v1099_v16  }
 0xa2b   :  { %v1053_v36 = vpop.permute.xlu1 %1052 }
 0xa2c   :  { %v3104_v37 = vadd.f32 %v1053_v36, %v1045_v55 }
 0xa2e   :  { %2586 = vtanh.f32 %v3104_v37 }
 0xa38   :  { %v2587_v38 = vpop.eup %2586 }
 0xa39   :  { %1058 = vrot.lane.b32.xlu1 %v2587_v38, %s2713_s3 }
 0xa3b   :  { %v1077_v3 = vpop.permute.xlu0 %1076 }
 0xa3c   :  { %v3115_v15 = vadd.f32 %v1077_v3, %v1069_v40  ;;  %v3119_v42 = vpop.permute.xlu1 %1094 }
 0xa3d   :  { %vm1096_vm2 = vcmp.eq.s32.totalorder %v3119_v42, 1 }
 0xa3e   :  { %2588 = vtanh.f32 %v3115_v15  ;;  %v3165_v6 = vsel %vm1096_vm2, %v3104_v37, %v3101_v35 }
 0xa48   :  { %v2589_v41 = vpop.eup %2588 }
 0xa49   :  { %1082 = vrot.lane.b32.xlu0 %v2589_v41, %s2713_s3 }
 0xa4c   :  { %v3129_v58 = vpop.permute.xlu0 %1101 }
 0xa4d   :  { %vm1103_vm3 = vcmp.eq.s32.totalorder %v3129_v58, 1 }
 0xa4e   :  { %v3176_v40 = vsel %vm1103_vm3, %v3115_v15, %v3112_v0 }
 0xaab   :  { %v1059_v8 = vpop.permute.xlu1 %1058 }
 0xaac   :  { %v1061_v21 = vmul.f32 %v2583_v32, %v1059_v8 }
 0xaae   :  { %v3125_v22 = vsel %vm1096_vm2, %v1061_v21, %v3053_v60 }
 0xaaf   :  { %1109 = vrot.lane.b32.xlu1 %v3125_v22, %s2714_s20 }
 0xabb   :  { %v1083_v43 = vpop.permute.xlu0 %1082 }
 0xabc   :  { %v1085_v44 = vmul.f32 %v2585_v2, %v1083_v43 }
 0xabe   :  { %v3135_v45 = vsel %vm1103_vm3, %v1085_v44, %v3063_v30  ;;  %v177_v30 = vadd.f32 %v2991_v26, %v2858_v31 }
 0xabf   :  { %1187 = vrot.lane.b32.xlu0 %v3135_v45, %s2714_s20 }
 0xb21   :  { %v1110_v27 = vpop.permute.xlu1 %1109 }
 0xb22   :  { %2293 = vmatmul.mubr.msk.f32.vlgmr.msra.gmra.mrb[16].mxu0 %vm109_vm0, %v1110_v27 }
 0xb23   :  { %2453 = vmatpush3.bf16.msra.mxu0 %v2802_v9  ;;  %2314 = vmatprep.mubr.msk.f32.mxu0 %vm2711_vm1, %v2712_v14 }
 0xb24   :  { %2454 = vmatprep.subr.bf16.mxu0 %v2710_v12 }
 0xb27   :  { %2456 = vmatpush3.bf16.msra.mxu0 %v2815_v13 }
 0xb28   :  { %2463 = vmatprep.subr.bf16.mxu0 %v2710_v12 }
 0xb31   :  { %v1188_v60 = vpop.permute.xlu0 %1187 }
 0xb32   :  { %2304 = vmatmul.mubr.msk.f32.vlgmr.msra.gmra.mrb[16].mxu1 %vm109_vm0, %v1188_v60 }
 0xb33   :  { %2459 = vmatpush3.bf16.msra.mxu1 %v2824_v17  ;;  %2325 = vmatprep.mubr.msk.f32.mxu1 %vm2711_vm1, %v2712_v14 }
 0xb34   :  { %2460 = vmatprep.subr.bf16.mxu1 %v2710_v12 }
 0xb37   :  { %2462 = vmatpush3.bf16.msra.mxu1 %v2831_v20 }
 0xb38   :  { %2469 = vmatprep.subr.bf16.mxu1 %v2710_v12 }
 0xbf5   :  { %v1179_v46 = vpop.f32.mrb[16].mxu0 }
 0xbf6   :  { %v1183_v47 = vadd.f32 %v1179_v46, %v177_v30  ;;  %v2294_v48 = vpop.f32.mrb[17].mxu0 }
 0xbf7   :  { %v169_v48 = vadd.f32 %v2985_v11, %v2863_v39 }
 0xbf8   :  { %2590 = vtanh.f32 %v1183_v47  ;;  %v2090_v54 = vmul.f32 -1.442695, %v1183_v47 }
 0xc02   :  { %v2591_v49 = vpop.eup %2590 }
 0xc03   :  { %1271 = vrot.lane.b32.xlu1 %v2591_v49, %s2713_s3 }
 0xc05   :  { %v1257_v51 = vpop.f32.mrb[16].mxu1 }
 0xc06   :  { %v1261_v23 = vadd.f32 %v1257_v51, %v173_v50  ;;  %v2305_v52 = vpop.f32.mrb[17].mxu1 }
 0xc08   :  { %2592 = vtanh.f32 %v1261_v23  ;;  %v2091_v56 = vmul.f32 -1.442695, %v1261_v23 }
 0xc09   :  { %2594 = vpow2.f32 %v2090_v54 }
 0xc0a   :  { %2596 = vpow2.f32 %v2091_v56 }
 0xc12   :  { %v2593_v53 = vpop.eup %2592 }
 0xc13   :  { %1295 = vrot.lane.b32.xlu0 %v2593_v53, %s2713_s3  ;;  %v2595_v26 = vpop.eup %2594 }
 0xc14   :  { %v1265_v32 = vadd.f32 1.0, %v2595_v26  ;;  %v2597_v57 = vpop.eup %2596 }
 0xc15   :  { %v1289_v1 = vadd.f32 1.0, %v2597_v57 }
 0xc16   :  { %2598 = vrcp.f32 %v1265_v32 }
 0xc17   :  { %2600 = vrcp.f32 %v1289_v1 }
 0xc20   :  { %v2599_v59 = vpop.eup %2598 }
 0xc21   :  { %v2601_v24 = vpop.eup %2600  ;;  %v1269_v16 = vmul.f32 %v2599_v59, %v3165_v6 }
 0xc22   :  { %v1293_v3 = vmul.f32 %v2601_v24, %v3176_v40 }
 0xc75   :  { %v1272_v61 = vpop.permute.xlu1 %1271 }
 0xc76   :  { %v1274_v63 = vmul.f32 %v2599_v59, %v1272_v61 }
 0xc78   :  { %1276 = vrot.lane.b32.xlu1 %v1274_v63, %s2713_s3 }
 0xc85   :  { %v1296_v2 = vpop.permute.xlu0 %1295 }
 0xc86   :  { %v1298_v5 = vmul.f32 %v2601_v24, %v1296_v2 }
 0xc88   :  { %1300 = vrot.lane.b32.xlu0 %v1298_v5, %s2713_s3 }
 0xcea   :  { %v1277_v55 = vpop.permute.xlu1 %1276 }
 0xceb   :  { %v3168_v36 = vadd.f32 %v1277_v55, %v1269_v16 }
 0xced   :  { %2602 = vtanh.f32 %v3168_v36  ;;  %v3223_v1 = vsel %vm1103_vm3, %v3168_v36, %v3165_v6 }
 0xcf7   :  { %v2603_v38 = vpop.eup %2602 }
 0xcf8   :  { %1282 = vrot.lane.b32.xlu1 %v2603_v38, %s2713_s3 }
 0xcfa   :  { %v1301_v35 = vpop.permute.xlu0 %1300 }
 0xcfb   :  { %v3179_v37 = vadd.f32 %v1301_v35, %v1293_v3 }
 0xcfd   :  { %2604 = vtanh.f32 %v3179_v37  ;;  %v3234_v55 = vsel %vm1096_vm2, %v3179_v37, %v3176_v40 }
 0xd07   :  { %v2605_v41 = vpop.eup %2604 }
 0xd08   :  { %1306 = vrot.lane.b32.xlu0 %v2605_v41, %s2713_s3 }
 0xd6a   :  { %v1283_v8 = vpop.permute.xlu1 %1282 }
 0xd6b   :  { %v1285_v21 = vmul.f32 %v2599_v59, %v1283_v8 }
 0xd6d   :  { %v3186_v43 = vsel %vm1103_vm3, %v1285_v21, %v3125_v22 }
 0xd6e   :  { %1317 = vrot.lane.b32.xlu1 %v3186_v43, %s2714_s20 }
 0xd7a   :  { %v1307_v0 = vpop.permute.xlu0 %1306 }
 0xd7b   :  { %v1309_v15 = vmul.f32 %v2601_v24, %v1307_v0 }
 0xd7d   :  { %v3193_v44 = vsel %vm1096_vm2, %v1309_v15, %v3135_v45  ;;  %v181_v45 = vadd.f32 %v2995_v34, %v2858_v31 }
 0xd7e   :  { %1395 = vrot.lane.b32.xlu0 %v3193_v44, %s2714_s20 }
 0xde0   :  { %v1318_v27 = vpop.permute.xlu1 %1317 }
 0xde1   :  { %2315 = vmatmul.mubr.msk.f32.vlgmr.msra.gmra.mrb[18].mxu0 %vm109_vm0, %v1318_v27 }
 0xde2   :  { %2465 = vmatpush3.bf16.msra.mxu0 %v2802_v9  ;;  %2336 = vmatprep.mubr.msk.f32.mxu0 %vm2711_vm1, %v2712_v14 }
 0xde3   :  { %2466 = vmatprep.subr.bf16.mxu0 %v2710_v12 }
 0xde6   :  { %2468 = vmatpush3.bf16.msra.mxu0 %v2815_v13 }
 0xde7   :  { %2475 = vmatprep.subr.bf16.mxu0 %v2710_v12 }
 0xdf0   :  { %v1396_v22 = vpop.permute.xlu0 %1395 }
 0xdf1   :  { %2326 = vmatmul.mubr.msk.f32.vlgmr.msra.gmra.mrb[18].mxu1 %vm109_vm0, %v1396_v22 }
 0xdf2   :  { %2471 = vmatpush3.bf16.msra.mxu1 %v2824_v17  ;;  %2347 = vmatprep.mubr.msk.f32.mxu1 %vm2711_vm1, %v2712_v14 }
 0xdf3   :  { %2472 = vmatprep.subr.bf16.mxu1 %v2710_v12 }
 0xdf6   :  { %2474 = vmatpush3.bf16.msra.mxu1 %v2831_v20 }
 0xdf7   :  { %2481 = vmatprep.subr.bf16.mxu1 %v2710_v12 }
 0xeb4   :  { %v1387_v60 = vpop.f32.mrb[18].mxu0 }
 0xeb5   :  { %v1391_v30 = vadd.f32 %v1387_v60, %v181_v45  ;;  %v2316_v46 = vpop.f32.mrb[19].mxu0 }
 0xeb7   :  { %2606 = vtanh.f32 %v1391_v30  ;;  %v2094_v52 = vmul.f32 -1.442695, %v1391_v30 }
 0xec1   :  { %v2607_v47 = vpop.eup %2606 }
 0xec2   :  { %1479 = vrot.lane.b32.xlu1 %v2607_v47, %s2713_s3 }
 0xec4   :  { %v1465_v49 = vpop.f32.mrb[18].mxu1 }
 0xec5   :  { %v1469_v50 = vadd.f32 %v1465_v49, %v169_v48  ;;  %v2327_v51 = vpop.f32.mrb[19].mxu1 }
 0xec7   :  { %2608 = vtanh.f32 %v1469_v50  ;;  %v2095_v53 = vmul.f32 -1.442695, %v1469_v50 }
 0xec8   :  { %2610 = vpow2.f32 %v2094_v52 }
 0xec9   :  { %2612 = vpow2.f32 %v2095_v53 }
 0xed1   :  { %v2609_v23 = vpop.eup %2608 }
 0xed2   :  { %1503 = vrot.lane.b32.xlu0 %v2609_v23, %s2713_s3  ;;  %v2611_v34 = vpop.eup %2610 }
 0xed3   :  { %v1473_v54 = vadd.f32 1.0, %v2611_v34  ;;  %v2613_v26 = vpop.eup %2612 }
 0xed4   :  { %v1497_v59 = vadd.f32 1.0, %v2613_v26 }
 0xed5   :  { %2614 = vrcp.f32 %v1473_v54 }
 0xed6   :  { %2616 = vrcp.f32 %v1497_v59 }
 0xedf   :  { %v2615_v56 = vpop.eup %2614 }
 0xee0   :  { %v2617_v11 = vpop.eup %2616  ;;  %v1477_v24 = vmul.f32 %v2615_v56, %v3223_v1 }
 0xee1   :  { %v1501_v58 = vmul.f32 %v2617_v11, %v3234_v55 }
 0xf34   :  { %v1480_v32 = vpop.permute.xlu1 %1479 }
 0xf35   :  { %v1482_v57 = vmul.f32 %v2615_v56, %v1480_v32 }
 0xf37   :  { %1484 = vrot.lane.b32.xlu1 %v1482_v57, %s2713_s3 }
 0xf44   :  { %v1504_v61 = vpop.permute.xlu0 %1503 }
 0xf45   :  { %v1506_v63 = vmul.f32 %v2617_v11, %v1504_v61 }
 0xf47   :  { %1508 = vrot.lane.b32.xlu0 %v1506_v63, %s2713_s3 }
 0xfa9   :  { %v1485_v2 = vpop.permute.xlu1 %1484 }
 0xfaa   :  { %v3226_v5 = vadd.f32 %v1485_v2, %v1477_v24 }
 0xfac   :  { %2618 = vtanh.f32 %v3226_v5  ;;  %v1519_v52 = vsel %vm879_vm13, %v3226_v5, %v3223_v1 }
 0xfb6   :  { %v2619_v16 = vpop.eup %2618 }
 0xfb7   :  { %1490 = vrot.lane.b32.xlu1 %v2619_v16, %s2713_s3  ;;  %v191_v16 = vadd.f32 %v2854_v29, %v2858_v31 }
 0xfb9   :  { %v1509_v6 = vpop.permute.xlu0 %1508 }
 0xfba   :  { %v3237_v36 = vadd.f32 %v1509_v6, %v1501_v58 }
 0xfbc   :  { %2620 = vtanh.f32 %v3237_v36 }
 0xfc6   :  { %v2621_v38 = vpop.eup %2620 }
 0xfc7   :  { %1514 = vrot.lane.b32.xlu0 %v2621_v38, %s2713_s3  ;;  %v159_v38 = vadd.f32 %v2852_v28, %v2863_v39 }
0x1029   :  { %v1491_v3 = vpop.permute.xlu1 %1490 }
0x102a   :  { %v1493_v35 = vmul.f32 %v2615_v56, %v1491_v3  ;;  %v1521_v56 = vsel %vm872_vm12, %v3237_v36, %v3234_v55 }
0x102c   :  { %v3244_v41 = vsel %vm879_vm13, %v1493_v35, %v3186_v43 }
0x102d   :  { %1525 = vrot.lane.b32.xlu1 %v3244_v41, %s2714_s20 }
0x1039   :  { %v1515_v42 = vpop.permute.xlu0 %1514 }
0x103a   :  { %v1517_v40 = vmul.f32 %v2617_v11, %v1515_v42 }
0x103c   :  { %v3251_v37 = vsel %vm872_vm12, %v1517_v40, %v3193_v44 }
0x103d   :  { %1603 = vrot.lane.b32.xlu0 %v3251_v37, %s2714_s20 }
0x109f   :  { %v1526_v8 = vpop.permute.xlu1 %1525 }
0x10a0   :  { %2337 = vmatmul.mubr.msk.f32.vlgmr.msra.gmra.mrb[20].mxu0 %vm109_vm0, %v1526_v8 }
0x10a1   :  { %2477 = vmatpush3.bf16.msra.mxu0 %v2802_v9  ;;  %2358 = vmatprep.mubr.msk.f32.mxu0 %vm2711_vm1, %v2712_v14  ;;  %v187_v9 = vadd.f32 %v2848_v25, %v2858_v31 }
0x10a2   :  { %2478 = vmatprep.subr.bf16.mxu0 %v2710_v12 }
0x10a5   :  { %2480 = vmatpush3.bf16.msra.mxu0 %v2815_v13 }
0x10a6   :  { %2487 = vmatprep.subr.bf16.mxu0 %v2710_v12 }
0x10af   :  { %v1604_v21 = vpop.permute.xlu0 %1603 }
0x10b0   :  { %2348 = vmatmul.mubr.msk.f32.vlgmr.msra.gmra.mrb[20].mxu1 %vm109_vm0, %v1604_v21 }
0x10b1   :  { %2483 = vmatpush3.bf16.msra.mxu1 %v2824_v17  ;;  %2369 = vmatprep.mubr.msk.f32.mxu1 %vm2711_vm1, %v2712_v14  ;;  %v163_v17 = vadd.f32 %v2860_v33, %v2863_v39 }
0x10b2   :  { %2484 = vmatprep.subr.bf16.mxu1 %v2710_v12 }
0x10b5   :  { %2486 = vmatpush3.bf16.msra.mxu1 %v2831_v20 }
0x1173   :  { %v1595_v43 = vpop.f32.mrb[20].mxu0 }
0x1174   :  { %v1599_v0 = vadd.f32 %v1595_v43, %v187_v9  ;;  %v2338_v13 = vpop.f32.mrb[21].mxu0 }
0x1176   :  { %2622 = vtanh.f32 %v1599_v0  ;;  %v2098_v20 = vmul.f32 -1.442695, %v1599_v0 }
0x1180   :  { %v2623_v15 = vpop.eup %2622 }
0x1181   :  { %1687 = vrot.lane.b32.xlu1 %v2623_v15, %s2713_s3 }
0x1183   :  { %v1673_v44 = vpop.f32.mrb[20].mxu1 }
0x1184   :  { %v1677_v27 = vadd.f32 %v1673_v44, %v163_v17  ;;  %v2349_v22 = vpop.f32.mrb[21].mxu1 }
0x1186   :  { %2624 = vtanh.f32 %v1677_v27  ;;  %v2099_v60 = vmul.f32 -1.442695, %v1677_v27 }
0x1187   :  { %2626 = vpow2.f32 %v2098_v20 }
0x1188   :  { %2628 = vpow2.f32 %v2099_v60 }
0x1190   :  { %v2625_v45 = vpop.eup %2624 }
0x1191   :  { %1711 = vrot.lane.b32.xlu0 %v2625_v45, %s2713_s3  ;;  %v2627_v25 = vpop.eup %2626 }
0x1192   :  { %v1681_v30 = vadd.f32 1.0, %v2627_v25  ;;  %v2629_v46 = vpop.eup %2628 }
0x1193   :  { %v1705_v50 = vadd.f32 1.0, %v2629_v46 }
0x1194   :  { %2630 = vrcp.f32 %v1681_v30  ;;  %v1945_v30 = vld [vmem:[%s3374_s6 + $0x8] sm:$0xff] }
0x1195   :  { %2632 = vrcp.f32 %v1705_v50  ;;  %v2488_v46 = vpack.c.bf16 %v1945_v30, %v1944_v10  ;;  %v1949_v50 = vld [vmem:[%s3374_s6 + $0x28] sm:$0xff] }
0x119e   :  { %v2631_v47 = vpop.eup %2630 }
0x119f   :  { %v2633_v33 = vpop.eup %2632  ;;  %v1685_v34 = vmul.f32 %v2631_v47, %v1519_v52 }
0x11a0   :  { %v1709_v32 = vmul.f32 %v2633_v33, %v1521_v56 }
0x11f3   :  { %v1688_v48 = vpop.permute.xlu1 %1687 }
0x11f4   :  { %v1690_v49 = vmul.f32 %v2631_v47, %v1688_v48 }
0x11f6   :  { %1692 = vrot.lane.b32.xlu1 %v1690_v49, %s2713_s3  ;;  %v1948_v49 = vld [vmem:[%s3374_s6 + $0x20] sm:$0xff] }
0x1203   :  { %v1712_v51 = vpop.permute.xlu0 %1711 }
0x1204   :  { %v1714_v23 = vmul.f32 %v2633_v33, %v1712_v51  ;;  %v1950_v51 = vld [vmem:[%s3374_s6 + $0x30] sm:$0xff] }
0x1206   :  { %1716 = vrot.lane.b32.xlu0 %v1714_v23, %s2713_s3  ;;  %v1951_v23 = vld [vmem:[%s3374_s6 + $0x38] sm:$0xff] }
0x1268   :  { %v1693_v53 = vpop.permute.xlu1 %1692 }
0x1269   :  { %v1695_v54 = vadd.f32 %v1693_v53, %v1685_v34  ;;  %v2497_v53 = vpack.c.bf16 %v1951_v23, %v1950_v51 }
0x126b   :  { %2634 = vtanh.f32 %v1695_v54  ;;  %v1727_v13 = vsel %vm655_vm9, %v1695_v54, %v1519_v52 }
0x1275   :  { %v2635_v26 = vpop.eup %2634 }
0x1276   :  { %1698 = vrot.lane.b32.xlu1 %v2635_v26, %s2713_s3 }
0x1278   :  { %v1717_v57 = vpop.permute.xlu0 %1716 }
0x1279   :  { %v1719_v59 = vadd.f32 %v1717_v57, %v1709_v32 }
0x127b   :  { %2636 = vtanh.f32 %v1719_v59  ;;  %v1729_v22 = vsel %vm648_vm8, %v1719_v59, %v1521_v56 }
0x1285   :  { %v2637_v11 = vpop.eup %2636 }
0x1286   :  { %1722 = vrot.lane.b32.xlu0 %v2637_v11, %s2713_s3 }
0x12e8   :  { %v1699_v62 = vpop.permute.xlu1 %1698 }
0x12e9   :  { %v1701_v61 = vmul.f32 %v2631_v47, %v1699_v62  ;;  %v1947_v47 = vld [vmem:[%s3374_s6 + $0x18] sm:$0xff]  ;;  %s2715_s6 = smov 96  }
0x12ea   :  { %v2491_v48 = vpack.c.bf16 %v1947_v47, %v1946_v4 }
0x12eb   :  { %v3289_v63 = vsel %vm655_vm9, %v1701_v61, %v3244_v41 }
0x12ec   :  { %1733 = vrot.lane.b32.xlu1 %v3289_v63, %s2714_s20 }
0x12f8   :  { %v1723_v1 = vpop.permute.xlu0 %1722 }
0x12f9   :  { %v1725_v19 = vmul.f32 %v2633_v33, %v1723_v1  ;;  %v2494_v33 = vpack.c.bf16 %v1949_v50, %v1948_v49 }
0x12fb   :  { %v3296_v24 = vsel %vm648_vm8, %v1725_v19, %v3251_v37 }
0x12fc   :  { %1810 = vrot.lane.b32.xlu0 %v3296_v24, %s2714_s20 }
0x135e   :  { %v1734_v2 = vpop.permute.xlu1 %1733 }
0x135f   :  { %2359 = vmatmul.mubr.msk.f32.vlgmr.msra.gmra.mrb[22].mxu0 %vm109_vm0, %v1734_v2 }
0x1360   :  { %2388 = vmatprep.mubr.msk.f32.mxu0 %vm2711_vm1, %v2712_v14  ;;  %2489 = vmatpush3.bf16.msra.mxu0 %v2488_v46  ;;  %vm1959_vm1 = vcmask 523264  }
0x1361   :  { %2490 = vmatprep.subr.bf16.mxu0 %v2710_v12 }
0x1364   :  { %2492 = vmatpush3.bf16.msra.mxu0 %v2491_v48 }
0x1365   :  { %2493 = vmatprep.subr.bf16.mxu0 %v2710_v12 }
0x1368   :  { %2495 = vmatpush3.bf16.msra.mxu0 %v2494_v33 }
0x1369   :  { %2496 = vmatprep.subr.bf16.mxu0 %v2710_v12 }
0x136c   :  { %2498 = vmatpush3.bf16.msra.mxu0 %v2497_v53 }
0x136e   :  { %v1811_v5 = vpop.permute.xlu0 %1810 }
0x136f   :  { %2370 = vmatmul.mubr.msk.f32.vlgmr.msra.gmra.mrb[22].mxu1 %vm109_vm0, %v1811_v5 }
0x1432   :  { %v1803_v55 = vpop.f32.mrb[22].mxu0 }
0x1433   :  { %v1807_v58 = vadd.f32 %v1803_v55, %v191_v16  ;;  %v2360_v6 = vpop.f32.mrb[23].mxu0 }
0x1435   :  { %2638 = vtanh.f32 %v1807_v58  ;;  %v2102_v42 = vmul.f32 -1.442695, %v1807_v58 }
0x143f   :  { %v2639_v36 = vpop.eup %2638 }
0x1440   :  { %1894 = vrot.lane.b32.xlu1 %v2639_v36, %s2713_s3 }
0x1442   :  { %v1880_v3 = vpop.f32.mrb[22].mxu1 }
0x1443   :  { %v1884_v35 = vadd.f32 %v1880_v3, %v159_v38  ;;  %v2371_v41 = vpop.f32.mrb[23].mxu1 }
0x1445   :  { %2640 = vtanh.f32 %v1884_v35  ;;  %v2103_v31 = vmul.f32 -1.442695, %v1884_v35 }
0x1446   :  { %2642 = vpow2.f32 %v2102_v42 }
0x1447   :  { %2644 = vpow2.f32 %v2103_v31 }
0x144f   :  { %v2641_v14 = vpop.eup %2640 }
0x1450   :  { %1918 = vrot.lane.b32.xlu0 %v2641_v14, %s2713_s3  ;;  %v2643_v29 = vpop.eup %2642 }
0x1451   :  { %v1888_v40 = vadd.f32 1.0, %v2643_v29  ;;  %v2645_v37 = vpop.eup %2644 }
0x1452   :  { %v1912_v43 = vadd.f32 1.0, %v2645_v37 }
0x1453   :  { %2646 = vrcp.f32 %v1888_v40 }
0x1454   :  { %2648 = vrcp.f32 %v1912_v43 }
0x145d   :  { %v2647_v8 = vpop.eup %2646 }
0x145e   :  { %v2649_v28 = vpop.eup %2648  ;;  %v1892_v15 = vmul.f32 %v2647_v8, %v1727_v13 }
0x145f   :  { %v1916_v45 = vmul.f32 %v2649_v28, %v1729_v22 }
0x14b2   :  { %v1895_v21 = vpop.permute.xlu1 %1894 }
0x14b3   :  { %v1897_v9 = vmul.f32 %v2647_v8, %v1895_v21 }
0x14b5   :  { %1899 = vrot.lane.b32.xlu1 %v1897_v9, %s2713_s3 }
0x14c2   :  { %v1919_v39 = vpop.permute.xlu0 %1918 }
0x14c3   :  { %v1921_v0 = vmul.f32 %v2649_v28, %v1919_v39 }
0x14c5   :  { %1923 = vrot.lane.b32.xlu0 %v1921_v0, %s2713_s3 }
0x1527   :  { %v1900_v17 = vpop.permute.xlu1 %1899 }
0x1528   :  { %v1902_v44 = vadd.f32 %v1900_v17, %v1892_v15 }
0x152a   :  { %2650 = vtanh.f32 %v1902_v44 }
0x1534   :  { %v2651_v27 = vpop.eup %2650 }
0x1535   :  { %1905 = vrot.lane.b32.xlu1 %v2651_v27, %s2713_s3 }
0x1537   :  { %v1924_v20 = vpop.permute.xlu0 %1923 }
0x1538   :  { %v1926_v25 = vadd.f32 %v1924_v20, %v1916_v45 }
0x153a   :  { %2652 = vtanh.f32 %v1926_v25 }
0x1544   :  { %v2653_v60 = vpop.eup %2652 }
0x1545   :  { %1929 = vrot.lane.b32.xlu0 %v2653_v60, %s2713_s3 }
0x15a7   :  { %v1906_v52 = vpop.permute.xlu1 %1905 }
0x15a8   :  { %v1908_v34 = vmul.f32 %v2647_v8, %v1906_v52 }
0x15aa   :  { %v1933_v54 = vsel %vm431_vm5, %v1908_v34, %v3289_v63 }
0x15ab   :  { %1936 = vrot.lane.b32.xlu1 %v1933_v54, %s2714_s20  ;;  %s2716_s20 = smov [#allocation7]  }
0x15ac   :  { %s2046_s27 = sshll.u32 %s2716_s20, 4  ;;  %s2047_s27 = int_to_ptr.vmem [resolvable:$true] %s2046_s27 }
0x15ad   :  { %s2680_s0 = scalar_lea.vmem %s2047_s27, 128  ;;  %p2685_p9 = scmp.lt.s32.totalorder %s2047_s27, %s2047_s27 }
0x15ae   :  { %p2681_p8 = scmp.ne.s32.totalorder %s2047_s27, %s2680_s0  ;;  %p2686_p10 = scmp.lt.s32.totalorder %s2680_s0, %s2680_s0 }
0x15b0   :  { %p2687_p11 = por %p2686_p10, %p2685_p9 }
0x15b2   :  { %p2688_p12 = pnand %p2687_p11, %p2681_p8 }
0x15b7   :  { %v1930_v26 = vpop.permute.xlu0 %1929 }
0x15b8   :  { %v1932_v56 = vmul.f32 %v2649_v28, %v1930_v26 }
0x15ba   :  { %v1934_v32 = vsel %vm424_vm4, %v1932_v56, %v3296_v24 }
0x15bb   :  { %1940 = vrot.lane.b32.xlu0 %v1934_v32, %s2715_s6 }
0x161d   :  { %v1937_v57 = vpop.permute.xlu1 %1936 }
0x162d   :  { %v1941_v59 = vpop.permute.xlu0 %1940 }
0x162e   :  { %v1943_v12 = vsel %vm109_vm0, %v1937_v57, %v1941_v59 }
0x162f   :  { %2389 = vmatmul.mubr.msk.f32.vlgmr.msra.gmra.mrb[24].mxu0 %vm1959_vm1, %v1943_v12 }
0x1702   :  { %v2029_v11 = vpop.f32.mrb[24].mxu0 }
0x1703   :  { %v2030_v62 = vadd.f32 %v2104_v18, %v2029_v11  ;;  %v2390_v61 = vpop.f32.mrb[25].mxu0 }
0x1705   :  { %v2106_v63 = vmul.f32 -1.442695, %v2030_v62 }
0x1707   :  { %2654 = vpow2.f32 %v2106_v63 }
0x1711   :  { %v2655_v1 = vpop.eup %2654 }
0x1712   :  { %v2036_v7 = vadd.f32 1.0, %v2655_v1 }
0x1714   :  { %2656 = vrcp.f32 %v2036_v7 }
0x171e   :  { %v2657_v19 = vpop.eup %2656 }
0x171f   :  { %2039 = vst [vmem:[#allocation7] sm:$0xff] %v2657_v19 }
0x1720   :  { %2691 = shalt.err (!%p2688_p12)
}
0x1721   :  { %s2692_s29 = scalar_lea.hbm %s3376_s8, 128 }
0x1722   :  { %p2693_p13 = scmp.ne.s32.totalorder %s3376_s8, %s2692_s29  ;;  %p2696_p0 = scmp.lt.u32.totalorder %s2692_s29, %s3376_s8 }
0x1724   :  { %p2698_p1 = pnand %p2696_p0, %p2693_p13 }
0x1726   :  { %2701 = shalt.err (!%p2698_p1)
}
0x1727   :  { %2049 = dma.vmem_to_hbm [thread:$0]  %s2047_s27, 128, %s3376_s8, [#allocation6]  }
0x1728   :  { %2704 = dma.done.wait [#allocation6], 128  }
0x1729   :  { %2705 = vsyncadd [#allocation6], 4294967168 }
0x172a   :  { %2053 = vsyncpa [#allocation5], 1 }
0x172b   :  { %2054 = vsyncpa [#allocation6], 1 }

</bundles_post_ra>
